<compile_context>
chip_gen: v7x
topology: tpu7x:2x2x1
jax: 0.10.0
libtpu: 0.0.40
codegen_flags: <defaults>
</compile_context>

<pallas_src>
import functools
import math

import jax
import jax.numpy as jnp
import numpy as np
from jax.experimental import pallas as pl
from jax.experimental.pallas import tpu as pltpu


# ---------------------------------------------------------------------------
# In-kernel helpers (traced inside the Pallas body; element-wise math in f32)
# ---------------------------------------------------------------------------
def _layernorm(x, gamma, beta, eps=1e-5):
    # x: (..., D); biased variance + eps=1e-5, matching PyTorch nn.LayerNorm.
    mean = jnp.mean(x, axis=-1, keepdims=True)
    xc = x - mean
    var = jnp.mean(xc * xc, axis=-1, keepdims=True)
    inv = jax.lax.rsqrt(var + eps)
    return xc * (inv * gamma) + beta


def _gelu(x):
    # PyTorch nn.GELU() default = exact erf formulation.
    return 0.5 * x * (1.0 + jax.lax.erf(x * (1.0 / math.sqrt(2.0))))


def _token_mix(x_f32, ln_g_ref, ln_b_ref, wt1t_ref, bt1_ref, wt2t_ref, bt2_ref, cdt):
    """Token-mixing branch. x_f32: (TB, N, D) f32 -> (TB, N, D) f32.

    Transpose-free: token weights are pre-transposed in the wrapper, so the
    branch is one pair of batched matmuls with D kept on lanes throughout.
    """
    tb = x_f32.shape[0]
    y = _layernorm(x_f32, ln_g_ref[0], ln_b_ref[0]).astype(cdt)        # (TB,N,D)
    w1 = jnp.broadcast_to(wt1t_ref[...], (tb,) + wt1t_ref.shape)       # (TB,T,N)
    h = jnp.einsum("btn,bnd->btd", w1, y,
                   preferred_element_type=jnp.float32)                 # (TB,T,D)
    h = _gelu(h + bt1_ref[...][None])                                  # +(1,T,1)
    w2 = jnp.broadcast_to(wt2t_ref[...], (tb,) + wt2t_ref.shape)       # (TB,N,T)
    o = jnp.einsum("bnt,btd->bnd", w2, h.astype(cdt),
                   preferred_element_type=jnp.float32)                 # (TB,N,D)
    return o + bt2_ref[...][None]                                      # +(1,N,1)


# ---------------------------------------------------------------------------
# Kernel 1: fully fused (channel weights resident), grid = (B // bb,)
# ---------------------------------------------------------------------------
def mixer_block_kernel(
    x_ref,                   # (TB, N, D)  input tile
    ln1_g_ref, ln1_b_ref,    # (1, D)
    wt1t_ref, bt1_ref,       # (T, N) cdt, (T, 1) f32   token fc1 (pre-transposed)
    wt2t_ref, bt2_ref,       # (N, T) cdt, (N, 1) f32   token fc2 (pre-transposed)
    ln2_g_ref, ln2_b_ref,    # (1, D)
    wc1_ref, bc1_ref,        # (D, C) cdt, (1, C) f32   channel fc1
    wc2_ref, bc2_ref,        # (C, D) cdt, (1, D) f32   channel fc2
    o_ref,                   # (TB, N, D)  output tile
):
    tb, n, d = x_ref.shape
    cdt = wt1t_ref.dtype

    x = x_ref[...].astype(jnp.float32)                                 # (TB,N,D)

    # ---- token-mixing branch + residual (no scratch round-trip) ----
    xmid = x + _token_mix(x, ln1_g_ref, ln1_b_ref,
                          wt1t_ref, bt1_ref, wt2t_ref, bt2_ref, cdt)

    # ---- channel-mixing branch (rows = TB*N, D stays on lanes) ----
    y2 = _layernorm(xmid, ln2_g_ref[0], ln2_b_ref[0])
    y2 = y2.reshape(tb * n, d).astype(cdt)                             # (TB*N,D)
    h = _gelu(jnp.dot(y2, wc1_ref[...],
                      preferred_element_type=jnp.float32) + bc1_ref[...])
    ch = jnp.dot(h.astype(cdt), wc2_ref[...],
                 preferred_element_type=jnp.float32) + bc2_ref[...]    # (TB*N,D)

    o_ref[...] = (xmid + ch.reshape(tb, n, d)).astype(o_ref.dtype)


# ---------------------------------------------------------------------------
# Kernel 2: channel dim C tiled over a second ("arbitrary") grid axis.
# grid = (B // bb, C // tc); used when wc1/wc2 do not comfortably fit VMEM.
# ---------------------------------------------------------------------------
def mixer_block_kernel_ctiled(
    x_ref,                   # (TB, N, D)   resident across c
    ln1_g_ref, ln1_b_ref,
    wt1t_ref, bt1_ref,
    wt2t_ref, bt2_ref,
    ln2_g_ref, ln2_b_ref,
    wc1_ref, bc1_ref,        # (D, tc), (1, tc)   — vary with c
    wc2_ref, bc2_ref,        # (tc, D), (1, D)
    o_ref,                   # (TB, N, D)
    xmid_ref,                # (TB, N, D)  f32 scratch: x + token branch
    y2_ref,                  # (TB*N, D)   cdt scratch: LayerNorm2 output
    acc_ref,                 # (TB*N, D)   f32 scratch: channel-MLP accumulator
):
    c = pl.program_id(1)
    tb, n, d = x_ref.shape
    cdt = wt1t_ref.dtype

    @pl.when(c == 0)
    def _():
        x = x_ref[...].astype(jnp.float32)
        xmid = x + _token_mix(x, ln1_g_ref, ln1_b_ref,
                              wt1t_ref, bt1_ref, wt2t_ref, bt2_ref, cdt)
        xmid_ref[...] = xmid
        y2 = _layernorm(xmid, ln2_g_ref[0], ln2_b_ref[0])
        y2_ref[...] = y2.reshape(tb * n, d).astype(y2_ref.dtype)
        acc_ref[...] = jnp.zeros_like(acc_ref)

    # one C-chunk of the channel MLP (GELU is element-wise per C column)
    h = _gelu(jnp.dot(y2_ref[...], wc1_ref[...],
                      preferred_element_type=jnp.float32) + bc1_ref[...])
    acc_ref[...] += jnp.dot(h.astype(cdt), wc2_ref[...],
                            preferred_element_type=jnp.float32)

    @pl.when(c == pl.num_programs(1) - 1)
    def _():
        out = xmid_ref[...] + (acc_ref[...] + bc2_ref[...]).reshape(tb, n, d)
        o_ref[...] = out.astype(o_ref.dtype)


# ---------------------------------------------------------------------------
# Wrapper-side heuristics (generation-aware)
# ---------------------------------------------------------------------------
def _largest_divisor_leq(n, cap):
    for cand in range(min(n, max(cap, 1)), 0, -1):
        if n % cand == 0:
            return cand
    return 1


def _vmem_capacity_bytes():
    try:
        v = int(pltpu.get_tpu_info().vmem_capacity_bytes)
        if v > 0:
            return v
    except Exception:
        pass
    return 128 << 20   # v5e / v6e default; v7x reports 64 MiB via get_tpu_info


def _num_tensorcores():
    try:
        info = pltpu.get_tpu_info()
        for attr in ("num_cores", "cores_per_chip", "num_tensorcores", "core_count"):
            v = getattr(info, attr, None)
            if isinstance(v, int) and v > 0:
                return v
    except Exception:
        pass
    return 1


def _choose_block_c(D, C, cdt, weight_budget_bytes):
    cb = int(np.dtype(cdt).itemsize)
    if 2 * D * C * cb <= weight_budget_bytes or C % 128 != 0 or C <= 128:
        return C                                       # fully resident
    for mult in range(C // 128, 0, -1):
        tc = mult * 128
        # wc1/wc2 C-tiles are double-buffered (their index varies with c)
        if C % tc == 0 and 2 * (2 * D * tc * cb) <= weight_budget_bytes:
            return tc
    return 128


def _choose_block_b(B, N, n_tc):
    # Target M = bb*N of ~1024 rows for the channel matmuls.
    bb = _largest_divisor_leq(B, max(1, 1024 // max(N, 1)))
    # Only force multiple grid steps when the chip really has >1 TensorCore
    # (v7x); on single-TC v5e/v6e a bigger bb always wins.
    while n_tc > 1 and bb > 1 and B // bb < min(n_tc, B):
        bb = _largest_divisor_leq(B, bb - 1)
    return bb


def _vmem_estimate(bb, N, D, T, C, tc, cdt, x_itemsize, single_buffer):
    cb = int(np.dtype(cdt).itemsize)
    wmul = 1 if single_buffer else 2
    token_w = wmul * (2 * T * N * cb + (T + N) * 4 + 4 * D * 4)        # weights + LN
    if tc == C:
        chan_w = wmul * (2 * D * C * cb + (C + D) * 4)
        scratch = 0
        chunk = C
    else:
        chan_w = 2 * (2 * D * tc * cb + tc * 4) + wmul * D * 4
        scratch = bb * N * D * (4 + cb + 4)                            # xmid, y2, acc
        chunk = tc
    io = 2 * 2 * bb * N * D * x_itemsize                               # x + o, dbl-buf
    interm = bb * (3 * N * D * 4 + T * D * 4 + N * chunk * 4
                   + (T * N + N * T) * cb)                             # working set
    return token_w + chan_w + scratch + io + interm + (4 << 20)


def _pack_params(params, cdt):
    (ln1_g, ln1_b, wt1, bt1, wt2, bt2, ln2_g, ln2_b, wc1, bc1, wc2, bc2) = params
    f32 = jnp.float32
    return (
        ln1_g.astype(f32), ln1_b.astype(f32),
        jnp.transpose(wt1).astype(cdt),        # (T, N)
        bt1.reshape(-1, 1).astype(f32),        # (T, 1)
        jnp.transpose(wt2).astype(cdt),        # (N, T)
        bt2.reshape(-1, 1).astype(f32),        # (N, 1)
        ln2_g.astype(f32), ln2_b.astype(f32),
        wc1.astype(cdt),                       # (D, C)
        bc1.reshape(1, -1).astype(f32),        # (1, C)
        wc2.astype(cdt),                       # (C, D)
        bc2.reshape(1, -1).astype(f32),        # (1, D)
    )


# ---------------------------------------------------------------------------
# Public wrapper
# ---------------------------------------------------------------------------
@functools.partial(
    jax.jit,
    static_argnames=("compute_dtype", "block_b", "block_c", "single_buffer_weights"),
)
def mixer_block(x, params, compute_dtype=None, block_b=None, block_c=None,
                single_buffer_weights=True):
    B, N, D = x.shape
    cdt = np.dtype(compute_dtype) if compute_dtype is not None else np.dtype(x.dtype)
    p = _pack_params(params, cdt)
    T = p[2].shape[0]
    C = p[9].shape[1]
    x_itemsize = int(np.dtype(x.dtype).itemsize)

    vmem_cap = _vmem_capacity_bytes()
    ceiling = int(vmem_cap * 0.85)            # ~108 MiB on v5e/v6e, ~54 MiB on v7x
    n_tc = _num_tensorcores()

    tc = block_c if block_c is not None else _choose_block_c(D, C, cdt, ceiling // 3)
    if C % tc != 0:
        raise ValueError(f"block_c={tc} must divide channel_dim={C}")
    bb = block_b if block_b is not None else _choose_block_b(B, N, n_tc)
    if B % bb != 0:
        raise ValueError(f"block_b={bb} must divide batch={B}")

    vmem_est = _vmem_estimate(bb, N, D, T, C, tc, cdt, x_itemsize, single_buffer_weights)
    while block_b is None and vmem_est > ceiling and bb > 1:   # auto-retile batch
        bb = _largest_divisor_leq(B, bb - 1)
        vmem_est = _vmem_estimate(bb, N, D, T, C, tc, cdt, x_itemsize, single_buffer_weights)
    if vmem_est > ceiling:
        raise ValueError(
            f"estimated VMEM {vmem_est >> 20} MiB exceeds {ceiling >> 20} MiB; "
            "reduce block_b/block_c or use compute_dtype=jnp.bfloat16")
    vmem_limit = int(min(ceiling, max(vmem_est, 24 << 20)))

    def const_spec(shape):
        # Constant index_map -> single-buffer (double-buffering buys nothing).
        if single_buffer_weights:
            return pl.BlockSpec(shape, lambda *_: (0,) * len(shape),
                                pipeline_mode=pl.Buffered(1))
        return pl.BlockSpec(shape, lambda *_: (0,) * len(shape))

    common_specs = [
        const_spec((1, D)), const_spec((1, D)),          # ln1 gamma / beta
        const_spec((T, N)), const_spec((T, 1)),          # token fc1 (wT, b col)
        const_spec((N, T)), const_spec((N, 1)),          # token fc2 (wT, b col)
        const_spec((1, D)), const_spec((1, D)),          # ln2 gamma / beta
    ]

    n_c = C // tc
    if n_c == 1:
        grid = (B // bb,)
        in_specs = ([pl.BlockSpec((bb, N, D), lambda b: (b, 0, 0))]
                    + common_specs
                    + [const_spec((D, C)), const_spec((1, C)),
                       const_spec((C, D)), const_spec((1, D))])
        out_specs = pl.BlockSpec((bb, N, D), lambda b: (b, 0, 0))
        scratch = []
        kernel = mixer_block_kernel
        dims = ("parallel",)
    else:
        grid = (B // bb, n_c)
        in_specs = ([pl.BlockSpec((bb, N, D), lambda b, c: (b, 0, 0))]
                    + common_specs
                    + [pl.BlockSpec((D, tc), lambda b, c: (0, c)),
                       pl.BlockSpec((1, tc), lambda b, c: (0, c)),
                       pl.BlockSpec((tc, D), lambda b, c: (c, 0)),
                       const_spec((1, D))])
        out_specs = pl.BlockSpec((bb, N, D), lambda b, c: (b, 0, 0))
        scratch = [pltpu.VMEM((bb, N, D), jnp.float32),
                   pltpu.VMEM((bb * N, D), cdt),
                   pltpu.VMEM((bb * N, D), jnp.float32)]
        kernel = mixer_block_kernel_ctiled
        dims = ("parallel", "arbitrary")

    flops = 4 * B * N * D * (T + C)                      # 2 matmuls per branch
    transcendentals = B * (D * T + N * C)                # erf in GELU
    bytes_accessed = (2 * x.size * x_itemsize
                      + sum(int(a.size) * np.dtype(a.dtype).itemsize for a in p))
    cost = pl.CostEstimate(flops=flops, transcendentals=transcendentals,
                           bytes_accessed=bytes_accessed)

    return pl.pallas_call(
        kernel,
        out_shape=jax.ShapeDtypeStruct((B, N, D), x.dtype),
        grid_spec=pltpu.PrefetchScalarGridSpec(
            num_scalar_prefetch=0,
            grid=grid,
            in_specs=in_specs,
            out_specs=out_specs,
            scratch_shapes=scratch,
        ),
        compiler_params=pltpu.CompilerParams(
            dimension_semantics=dims,
            vmem_limit_bytes=vmem_limit,
        ),
        cost_estimate=cost,
    )(x, *p)


def _call(x, params, **kw):
    """Call the kernel; fall back to double-buffered constants if the runtime
    rejects pipeline_mode=pl.Buffered(1)."""
    try:
        return mixer_block(x, params, **kw)
    except Exception:
        return mixer_block(x, params, single_buffer_weights=False, **kw)


# ---------------------------------------------------------------------------
# Pure-JAX reference (mirrors the PyTorch forward exactly)
# ---------------------------------------------------------------------------
def mixer_block_ref(x, params):
    (ln1_g, ln1_b, wt1, bt1, wt2, bt2, ln2_g, ln2_b, wc1, bc1, wc2, bc2) = params

    def ln(v, g, b):
        m = jnp.mean(v, axis=-1, keepdims=True)
        var = jnp.mean((v - m) ** 2, axis=-1, keepdims=True)
        return (v - m) / jnp.sqrt(var + 1e-5) * g + b

    def gelu(v):
        return 0.5 * v * (1.0 + jax.lax.erf(v / math.sqrt(2.0)))

    y = ln(x, ln1_g[0], ln1_b[0])
    y = jnp.swapaxes(y, 1, 2)                       # b n d -> b d n
    y = gelu(y @ wt1 + bt1[0]) @ wt2 + bt2[0]
    y = jnp.swapaxes(y, 1, 2)                       # b d n -> b n d
    x = x + y

    y = ln(x, ln2_g[0], ln2_b[0])
    y = gelu(y @ wc1 + bc1[0]) @ wc2 + bc2[0]
    return x + y


# ---------------------------------------------------------------------------
# Deterministic parameter init + demo
# ---------------------------------------------------------------------------
def init_params(key, dim, num_patch, token_dim, channel_dim, dtype=jnp.float32):
    ks = jax.random.split(key, 8)

    def lin(k, fan_in, shape):
        bound = 1.0 / math.sqrt(fan_in)
        return jax.random.uniform(k, shape, dtype, -bound, bound)

    ln1_g = jnp.ones((1, dim), dtype)
    ln1_b = jnp.zeros((1, dim), dtype)
    wt1 = lin(ks[0], num_patch, (num_patch, token_dim))
    bt1 = lin(ks[1], num_patch, (1, token_dim))
    wt2 = lin(ks[2], token_dim, (token_dim, num_patch))
    bt2 = lin(ks[3], token_dim, (1, num_patch))
    ln2_g = jnp.ones((1, dim), dtype)
    ln2_b = jnp.zeros((1, dim), dtype)
    wc1 = lin(ks[4], dim, (dim, channel_dim))
    bc1 = lin(ks[5], dim, (1, channel_dim))
    wc2 = lin(ks[6], channel_dim, (channel_dim, dim))
    bc2 = lin(ks[7], channel_dim, (1, dim))
    return (ln1_g, ln1_b, wt1, bt1, wt2, bt2, ln2_g, ln2_b, wc1, bc1, wc2, bc2)


if __name__ == "__main__":
    # MixerBlock(dim=D, num_patch=N, token_dim, channel_dim); dropout=0.0 (identity).
    B, N, D = 2, 16, 32
    TOKEN_DIM, CHANNEL_DIM = 8, 64

    key = jax.random.PRNGKey(0)
    kx, kp = jax.random.split(key)
    x = jax.random.normal(kx, (B, N, D), jnp.float32)
    params = init_params(kp, D, N, TOKEN_DIM, CHANNEL_DIM)

    ref = mixer_block_ref(x, params)

    # Exact path: matmul dtype == input dtype (f32) -> matches PyTorch semantics.
    out = jax.block_until_ready(_call(x, params))
    np.testing.assert_allclose(np.asarray(out), np.asarray(ref), atol=1e-4, rtol=1e-4)

    # bf16 MXU path (f32 accumulation) -- perf mode, looser tolerance.
    out_bf16 = jax.block_until_ready(_call(x, params, compute_dtype=jnp.bfloat16))
    np.testing.assert_allclose(np.asarray(out_bf16), np.asarray(ref), atol=5e-2, rtol=5e-2)

    # Channel-tiled (accumulator) path, as used when wc1/wc2 exceed the VMEM
    # weight budget on v7x; forced here to exercise the second kernel.
    out_ct = jax.block_until_ready(_call(x, params, block_c=CHANNEL_DIM // 2))
    np.testing.assert_allclose(np.asarray(out_ct), np.asarray(ref), atol=1e-4, rtol=1e-4)

    print("KERNEL_OK")
</pallas_src>

<mosaic_0001>
module attributes {stable_mosaic.version = 11 : i64} {
  func.func @mixer_block_kernel(%arg0: i32, %arg1: memref<2x16x32xf32, #tpu.memory_space<vmem>>, %arg2: memref<1x32xf32, #tpu.memory_space<vmem>>, %arg3: memref<1x32xf32, #tpu.memory_space<vmem>>, %arg4: memref<8x16xf32, #tpu.memory_space<vmem>>, %arg5: memref<8x1xf32, #tpu.memory_space<vmem>>, %arg6: memref<16x8xf32, #tpu.memory_space<vmem>>, %arg7: memref<16x1xf32, #tpu.memory_space<vmem>>, %arg8: memref<1x32xf32, #tpu.memory_space<vmem>>, %arg9: memref<1x32xf32, #tpu.memory_space<vmem>>, %arg10: memref<32x64xf32, #tpu.memory_space<vmem>>, %arg11: memref<1x64xf32, #tpu.memory_space<vmem>>, %arg12: memref<64x32xf32, #tpu.memory_space<vmem>>, %arg13: memref<1x32xf32, #tpu.memory_space<vmem>>, %arg14: memref<2x16x32xf32, #tpu.memory_space<vmem>>) attributes {dimension_semantics = [#tpu.dimension_semantics<parallel>], iteration_bounds = array<i64: 1>, scalar_prefetch = 0 : i64, scratch_operands = 0 : i64, tpu.core_type = #tpu.core_type<tc>, window_params = [{transform_indices = @transform_0, window_bounds = array<i64: 2, 16, 32>}, {pipeline_mode = #tpu.pipeline_mode<synchronous>, transform_indices = @transform_1, window_bounds = array<i64: 1, 32>}, {pipeline_mode = #tpu.pipeline_mode<synchronous>, transform_indices = @transform_2, window_bounds = array<i64: 1, 32>}, {pipeline_mode = #tpu.pipeline_mode<synchronous>, transform_indices = @transform_3, window_bounds = array<i64: 8, 16>}, {pipeline_mode = #tpu.pipeline_mode<synchronous>, transform_indices = @transform_4, window_bounds = array<i64: 8, 1>}, {pipeline_mode = #tpu.pipeline_mode<synchronous>, transform_indices = @transform_5, window_bounds = array<i64: 16, 8>}, {pipeline_mode = #tpu.pipeline_mode<synchronous>, transform_indices = @transform_6, window_bounds = array<i64: 16, 1>}, {pipeline_mode = #tpu.pipeline_mode<synchronous>, transform_indices = @transform_7, window_bounds = array<i64: 1, 32>}, {pipeline_mode = #tpu.pipeline_mode<synchronous>, transform_indices = @transform_8, window_bounds = array<i64: 1, 32>}, {pipeline_mode = #tpu.pipeline_mode<synchronous>, transform_indices = @transform_9, window_bounds = array<i64: 32, 64>}, {pipeline_mode = #tpu.pipeline_mode<synchronous>, transform_indices = @transform_10, window_bounds = array<i64: 1, 64>}, {pipeline_mode = #tpu.pipeline_mode<synchronous>, transform_indices = @transform_11, window_bounds = array<i64: 64, 32>}, {pipeline_mode = #tpu.pipeline_mode<synchronous>, transform_indices = @transform_12, window_bounds = array<i64: 1, 32>}, {transform_indices = @transform_13, window_bounds = array<i64: 2, 16, 32>}]} {
    %c0 = arith.constant 0 : index
    %c0_0 = arith.constant 0 : index
    %c0_1 = arith.constant 0 : index
    %0 = vector.load %arg1[%c0, %c0_0, %c0_1] : memref<2x16x32xf32, #tpu.memory_space<vmem>>, vector<2x16x32xf32>
    %c0_2 = arith.constant 0 : index
    %c0_3 = arith.constant 0 : index
    %1 = vector.load %arg2[%c0_2, %c0_3] : memref<1x32xf32, #tpu.memory_space<vmem>>, vector<1x32xf32>
    %2 = vector.shape_cast %1 : vector<1x32xf32> to vector<32xf32>
    %c0_4 = arith.constant 0 : index
    %c0_5 = arith.constant 0 : index
    %3 = vector.load %arg3[%c0_4, %c0_5] : memref<1x32xf32, #tpu.memory_space<vmem>>, vector<1x32xf32>
    %4 = vector.shape_cast %3 : vector<1x32xf32> to vector<32xf32>
    %cst = arith.constant dense<0.000000e+00> : vector<2x16xf32>
    %5 = vector.multi_reduction <add>, %0, %cst [2] : vector<2x16x32xf32> to vector<2x16xf32>
    %6 = vector.shape_cast %5 : vector<2x16xf32> to vector<2x16x1xf32>
    %cst_6 = arith.constant 3.200000e+01 : f32
    %7 = vector.broadcast %cst_6 : f32 to vector<2x16x1xf32>
    %8 = arith.divf %6, %7 : vector<2x16x1xf32>
    %9 = vector.broadcast %8 : vector<2x16x1xf32> to vector<2x16x32xf32>
    %10 = arith.subf %0, %9 : vector<2x16x32xf32>
    %11 = arith.mulf %10, %10 : vector<2x16x32xf32>
    %cst_7 = arith.constant dense<0.000000e+00> : vector<2x16xf32>
    %12 = vector.multi_reduction <add>, %11, %cst_7 [2] : vector<2x16x32xf32> to vector<2x16xf32>
    %13 = vector.shape_cast %12 : vector<2x16xf32> to vector<2x16x1xf32>
    %cst_8 = arith.constant 3.200000e+01 : f32
    %14 = vector.broadcast %cst_8 : f32 to vector<2x16x1xf32>
    %15 = arith.divf %13, %14 : vector<2x16x1xf32>
    %cst_9 = arith.constant 9.99999974E-6 : f32
    %16 = vector.broadcast %cst_9 : f32 to vector<2x16x1xf32>
    %17 = arith.addf %15, %16 : vector<2x16x1xf32>
    %18 = math.rsqrt %17 : vector<2x16x1xf32>
    %19 = vector.shape_cast %2 : vector<32xf32> to vector<1x1x32xf32>
    %20 = vector.broadcast %18 : vector<2x16x1xf32> to vector<2x16x32xf32>
    %21 = vector.broadcast %19 : vector<1x1x32xf32> to vector<2x16x32xf32>
    %22 = arith.mulf %20, %21 : vector<2x16x32xf32>
    %23 = arith.mulf %10, %22 : vector<2x16x32xf32>
    %24 = vector.shape_cast %4 : vector<32xf32> to vector<1x1x32xf32>
    %25 = vector.broadcast %24 : vector<1x1x32xf32> to vector<2x16x32xf32>
    %26 = arith.addf %23, %25 : vector<2x16x32xf32>
    %c0_10 = arith.constant 0 : index
    %c0_11 = arith.constant 0 : index
    %27 = vector.load %arg4[%c0_10, %c0_11] : memref<8x16xf32, #tpu.memory_space<vmem>>, vector<8x16xf32>
    %28 = vector.shape_cast %27 : vector<8x16xf32> to vector<1x8x16xf32>
    %29 = vector.broadcast %28 : vector<1x8x16xf32> to vector<2x8x16xf32>
    "tpu.trace_start"() <{level = 10 : i32, message = "btn,bnd->btd"}> : () -> ()
    %cst_12 = arith.constant dense<0.000000e+00> : vector<2x8x32xf32>
    %30 = tpu.matmul %29, %26, %cst_12 {dimension_numbers = #tpu.dot_dimension_numbers<[2], [1], [1], [2], [0, 0, 0, 1, 1, 2], [0], [0]>} : vector<2x8x16xf32>, vector<2x16x32xf32>, vector<2x8x32xf32> -> vector<2x8x32xf32>
    "tpu.trace_stop"() : () -> ()
    %c0_13 = arith.constant 0 : index
    %c0_14 = arith.constant 0 : index
    %31 = vector.load %arg5[%c0_13, %c0_14] : memref<8x1xf32, #tpu.memory_space<vmem>>, vector<8x1xf32>
    %32 = vector.shape_cast %31 : vector<8x1xf32> to vector<1x8x1xf32>
    %33 = vector.broadcast %32 : vector<1x8x1xf32> to vector<2x8x32xf32>
    %34 = arith.addf %30, %33 : vector<2x8x32xf32>
    %cst_15 = arith.constant 5.000000e-01 : f32
    %35 = vector.broadcast %cst_15 : f32 to vector<2x8x32xf32>
    %36 = arith.mulf %35, %34 : vector<2x8x32xf32>
    %cst_16 = arith.constant 0.707106769 : f32
    %37 = vector.broadcast %cst_16 : f32 to vector<2x8x32xf32>
    %38 = arith.mulf %34, %37 : vector<2x8x32xf32>
    %39 = math.erf %38 : vector<2x8x32xf32>
    %cst_17 = arith.constant 1.000000e+00 : f32
    %40 = vector.broadcast %cst_17 : f32 to vector<2x8x32xf32>
    %41 = arith.addf %40, %39 : vector<2x8x32xf32>
    %42 = arith.mulf %36, %41 : vector<2x8x32xf32>
    %c0_18 = arith.constant 0 : index
    %c0_19 = arith.constant 0 : index
    %43 = vector.load %arg6[%c0_18, %c0_19] : memref<16x8xf32, #tpu.memory_space<vmem>>, vector<16x8xf32>
    %44 = vector.shape_cast %43 : vector<16x8xf32> to vector<1x16x8xf32>
    %45 = vector.broadcast %44 : vector<1x16x8xf32> to vector<2x16x8xf32>
    "tpu.trace_start"() <{level = 10 : i32, message = "bnt,btd->bnd"}> : () -> ()
    %cst_20 = arith.constant dense<0.000000e+00> : vector<2x16x32xf32>
    %46 = tpu.matmul %45, %42, %cst_20 {dimension_numbers = #tpu.dot_dimension_numbers<[2], [1], [1], [2], [0, 0, 0, 1, 1, 2], [0], [0]>} : vector<2x16x8xf32>, vector<2x8x32xf32>, vector<2x16x32xf32> -> vector<2x16x32xf32>
    "tpu.trace_stop"() : () -> ()
    %c0_21 = arith.constant 0 : index
    %c0_22 = arith.constant 0 : index
    %47 = vector.load %arg7[%c0_21, %c0_22] : memref<16x1xf32, #tpu.memory_space<vmem>>, vector<16x1xf32>
    %48 = vector.shape_cast %47 : vector<16x1xf32> to vector<1x16x1xf32>
    %49 = vector.broadcast %48 : vector<1x16x1xf32> to vector<2x16x32xf32>
    %50 = arith.addf %46, %49 : vector<2x16x32xf32>
    %51 = arith.addf %0, %50 : vector<2x16x32xf32>
    %c0_23 = arith.constant 0 : index
    %c0_24 = arith.constant 0 : index
    %52 = vector.load %arg8[%c0_23, %c0_24] : memref<1x32xf32, #tpu.memory_space<vmem>>, vector<1x32xf32>
    %53 = vector.shape_cast %52 : vector<1x32xf32> to vector<32xf32>
    %c0_25 = arith.constant 0 : index
    %c0_26 = arith.constant 0 : index
    %54 = vector.load %arg9[%c0_25, %c0_26] : memref<1x32xf32, #tpu.memory_space<vmem>>, vector<1x32xf32>
    %55 = vector.shape_cast %54 : vector<1x32xf32> to vector<32xf32>
    %cst_27 = arith.constant dense<0.000000e+00> : vector<2x16xf32>
    %56 = vector.multi_reduction <add>, %51, %cst_27 [2] : vector<2x16x32xf32> to vector<2x16xf32>
    %57 = vector.shape_cast %56 : vector<2x16xf32> to vector<2x16x1xf32>
    %cst_28 = arith.constant 3.200000e+01 : f32
    %58 = vector.broadcast %cst_28 : f32 to vector<2x16x1xf32>
    %59 = arith.divf %57, %58 : vector<2x16x1xf32>
    %60 = vector.broadcast %59 : vector<2x16x1xf32> to vector<2x16x32xf32>
    %61 = arith.subf %51, %60 : vector<2x16x32xf32>
    %62 = arith.mulf %61, %61 : vector<2x16x32xf32>
    %cst_29 = arith.constant dense<0.000000e+00> : vector<2x16xf32>
    %63 = vector.multi_reduction <add>, %62, %cst_29 [2] : vector<2x16x32xf32> to vector<2x16xf32>
    %64 = vector.shape_cast %63 : vector<2x16xf32> to vector<2x16x1xf32>
    %cst_30 = arith.constant 3.200000e+01 : f32
    %65 = vector.broadcast %cst_30 : f32 to vector<2x16x1xf32>
    %66 = arith.divf %64, %65 : vector<2x16x1xf32>
    %cst_31 = arith.constant 9.99999974E-6 : f32
    %67 = vector.broadcast %cst_31 : f32 to vector<2x16x1xf32>
    %68 = arith.addf %66, %67 : vector<2x16x1xf32>
    %69 = math.rsqrt %68 : vector<2x16x1xf32>
    %70 = vector.shape_cast %53 : vector<32xf32> to vector<1x1x32xf32>
    %71 = vector.broadcast %69 : vector<2x16x1xf32> to vector<2x16x32xf32>
    %72 = vector.broadcast %70 : vector<1x1x32xf32> to vector<2x16x32xf32>
    %73 = arith.mulf %71, %72 : vector<2x16x32xf32>
    %74 = arith.mulf %61, %73 : vector<2x16x32xf32>
    %75 = vector.shape_cast %55 : vector<32xf32> to vector<1x1x32xf32>
    %76 = vector.broadcast %75 : vector<1x1x32xf32> to vector<2x16x32xf32>
    %77 = arith.addf %74, %76 : vector<2x16x32xf32>
    %78 = vector.shape_cast %77 : vector<2x16x32xf32> to vector<32x32xf32>
    %c0_32 = arith.constant 0 : index
    %c0_33 = arith.constant 0 : index
    %79 = vector.load %arg10[%c0_32, %c0_33] : memref<32x64xf32, #tpu.memory_space<vmem>>, vector<32x64xf32>
    %cst_34 = arith.constant dense<0.000000e+00> : vector<32x64xf32>
    %80 = tpu.matmul %78, %79, %cst_34 {dimension_numbers = #tpu.dot_dimension_numbers<[1], [0], [0], [1], [0, 0, 1, 1], [], []>} : vector<32x32xf32>, vector<32x64xf32>, vector<32x64xf32> -> vector<32x64xf32>
    %c0_35 = arith.constant 0 : index
    %c0_36 = arith.constant 0 : index
    %81 = vector.load %arg11[%c0_35, %c0_36] : memref<1x64xf32, #tpu.memory_space<vmem>>, vector<1x64xf32>
    %82 = vector.broadcast %81 : vector<1x64xf32> to vector<32x64xf32>
    %83 = arith.addf %80, %82 : vector<32x64xf32>
    %cst_37 = arith.constant 5.000000e-01 : f32
    %84 = vector.broadcast %cst_37 : f32 to vector<32x64xf32>
    %85 = arith.mulf %84, %83 : vector<32x64xf32>
    %cst_38 = arith.constant 0.707106769 : f32
    %86 = vector.broadcast %cst_38 : f32 to vector<32x64xf32>
    %87 = arith.mulf %83, %86 : vector<32x64xf32>
    %88 = math.erf %87 : vector<32x64xf32>
    %cst_39 = arith.constant 1.000000e+00 : f32
    %89 = vector.broadcast %cst_39 : f32 to vector<32x64xf32>
    %90 = arith.addf %89, %88 : vector<32x64xf32>
    %91 = arith.mulf %85, %90 : vector<32x64xf32>
    %c0_40 = arith.constant 0 : index
    %c0_41 = arith.constant 0 : index
    %92 = vector.load %arg12[%c0_40, %c0_41] : memref<64x32xf32, #tpu.memory_space<vmem>>, vector<64x32xf32>
    %cst_42 = arith.constant dense<0.000000e+00> : vector<32x32xf32>
    %93 = tpu.matmul %91, %92, %cst_42 {dimension_numbers = #tpu.dot_dimension_numbers<[1], [0], [0], [1], [0, 0, 1, 1], [], []>} : vector<32x64xf32>, vector<64x32xf32>, vector<32x32xf32> -> vector<32x32xf32>
    %c0_43 = arith.constant 0 : index
    %c0_44 = arith.constant 0 : index
    %94 = vector.load %arg13[%c0_43, %c0_44] : memref<1x32xf32, #tpu.memory_space<vmem>>, vector<1x32xf32>
    %95 = vector.broadcast %94 : vector<1x32xf32> to vector<32x32xf32>
    %96 = arith.addf %93, %95 : vector<32x32xf32>
    %97 = vector.shape_cast %96 : vector<32x32xf32> to vector<2x16x32xf32>
    %98 = arith.addf %51, %97 : vector<2x16x32xf32>
    %c0_45 = arith.constant 0 : index
    %c0_46 = arith.constant 0 : index
    %c0_47 = arith.constant 0 : index
    %99 = vector.load %arg14[%c0_45, %c0_46, %c0_47] : memref<2x16x32xf32, #tpu.memory_space<vmem>>, vector<2x16x32xf32>
    tpu.vector_store %arg14[%c0_45, %c0_46, %c0_47], %98 {strides = array<i32>} : memref<2x16x32xf32, #tpu.memory_space<vmem>>, vector<2x16x32xf32>,
    return
  }
  func.func @transform_0(%arg0: i32) -> (i32, i32, i32) {
    %c0_i32 = arith.constant 0 : i32
    %c0_i32_0 = arith.constant 0 : i32
    %c0_i32_1 = arith.constant 0 : i32
    return %arg0, %c0_i32, %c0_i32_0 : i32, i32, i32
  }
  func.func @transform_1(%arg0: i32) -> (i32, i32) {
    %c0_i32 = arith.constant 0 : i32
    %c0_i32_0 = arith.constant 0 : i32
    %c0_i32_1 = arith.constant 0 : i32
    return %c0_i32, %c0_i32_0 : i32, i32
  }
  func.func @transform_2(%arg0: i32) -> (i32, i32) {
    %c0_i32 = arith.constant 0 : i32
    %c0_i32_0 = arith.constant 0 : i32
    %c0_i32_1 = arith.constant 0 : i32
    return %c0_i32, %c0_i32_0 : i32, i32
  }
  func.func @transform_3(%arg0: i32) -> (i32, i32) {
    %c0_i32 = arith.constant 0 : i32
    %c0_i32_0 = arith.constant 0 : i32
    %c0_i32_1 = arith.constant 0 : i32
    return %c0_i32, %c0_i32_0 : i32, i32
  }
  func.func @transform_4(%arg0: i32) -> (i32, i32) {
    %c0_i32 = arith.constant 0 : i32
    %c0_i32_0 = arith.constant 0 : i32
    %c0_i32_1 = arith.constant 0 : i32
    return %c0_i32, %c0_i32_0 : i32, i32
  }
  func.func @transform_5(%arg0: i32) -> (i32, i32) {
    %c0_i32 = arith.constant 0 : i32
    %c0_i32_0 = arith.constant 0 : i32
    %c0_i32_1 = arith.constant 0 : i32
    return %c0_i32, %c0_i32_0 : i32, i32
  }
  func.func @transform_6(%arg0: i32) -> (i32, i32) {
    %c0_i32 = arith.constant 0 : i32
    %c0_i32_0 = arith.constant 0 : i32
    %c0_i32_1 = arith.constant 0 : i32
    return %c0_i32, %c0_i32_0 : i32, i32
  }
  func.func @transform_7(%arg0: i32) -> (i32, i32) {
    %c0_i32 = arith.constant 0 : i32
    %c0_i32_0 = arith.constant 0 : i32
    %c0_i32_1 = arith.constant 0 : i32
    return %c0_i32, %c0_i32_0 : i32, i32
  }
  func.func @transform_8(%arg0: i32) -> (i32, i32) {
    %c0_i32 = arith.constant 0 : i32
    %c0_i32_0 = arith.constant 0 : i32
    %c0_i32_1 = arith.constant 0 : i32
    return %c0_i32, %c0_i32_0 : i32, i32
  }
  func.func @transform_9(%arg0: i32) -> (i32, i32) {
    %c0_i32 = arith.constant 0 : i32
    %c0_i32_0 = arith.constant 0 : i32
    %c0_i32_1 = arith.constant 0 : i32
    return %c0_i32, %c0_i32_0 : i32, i32
  }
  func.func @transform_10(%arg0: i32) -> (i32, i32) {
    %c0_i32 = arith.constant 0 : i32
    %c0_i32_0 = arith.constant 0 : i32
    %c0_i32_1 = arith.constant 0 : i32
    return %c0_i32, %c0_i32_0 : i32, i32
  }
  func.func @transform_11(%arg0: i32) -> (i32, i32) {
    %c0_i32 = arith.constant 0 : i32
    %c0_i32_0 = arith.constant 0 : i32
    %c0_i32_1 = arith.constant 0 : i32
    return %c0_i32, %c0_i32_0 : i32, i32
  }
  func.func @transform_12(%arg0: i32) -> (i32, i32) {
    %c0_i32 = arith.constant 0 : i32
    %c0_i32_0 = arith.constant 0 : i32
    %c0_i32_1 = arith.constant 0 : i32
    return %c0_i32, %c0_i32_0 : i32, i32
  }
  func.func @transform_13(%arg0: i32) -> (i32, i32, i32) {
    %c0_i32 = arith.constant 0 : i32
    %c0_i32_0 = arith.constant 0 : i32
    %c0_i32_1 = arith.constant 0 : i32
    return %arg0, %c0_i32, %c0_i32_0 : i32, i32, i32
  }
}

module attributes {stable_mosaic.version = 11 : i64} {
  func.func @mixer_block_kernel(%arg0: i32, %arg1: memref<2x16x32xf32, #tpu.memory_space<vmem>>, %arg2: memref<1x32xf32, #tpu.memory_space<vmem>>, %arg3: memref<1x32xf32, #tpu.memory_space<vmem>>, %arg4: memref<8x16xf32, #tpu.memory_space<vmem>>, %arg5: memref<8x1xf32, #tpu.memory_space<vmem>>, %arg6: memref<16x8xf32, #tpu.memory_space<vmem>>, %arg7: memref<16x1xf32, #tpu.memory_space<vmem>>, %arg8: memref<1x32xf32, #tpu.memory_space<vmem>>, %arg9: memref<1x32xf32, #tpu.memory_space<vmem>>, %arg10: memref<32x64xf32, #tpu.memory_space<vmem>>, %arg11: memref<1x64xf32, #tpu.memory_space<vmem>>, %arg12: memref<64x32xf32, #tpu.memory_space<vmem>>, %arg13: memref<1x32xf32, #tpu.memory_space<vmem>>, %arg14: memref<2x16x32xf32, #tpu.memory_space<vmem>>) attributes {dimension_semantics = [#tpu.dimension_semantics<parallel>], iteration_bounds = array<i64: 1>, scalar_prefetch = 0 : i64, scratch_operands = 0 : i64, tpu.core_type = #tpu.core_type<tc>, window_params = [{transform_indices = @transform_0, window_bounds = array<i64: 2, 16, 32>}, {pipeline_mode = #tpu.pipeline_mode<synchronous>, transform_indices = @transform_1, window_bounds = array<i64: 1, 32>}, {pipeline_mode = #tpu.pipeline_mode<synchronous>, transform_indices = @transform_2, window_bounds = array<i64: 1, 32>}, {pipeline_mode = #tpu.pipeline_mode<synchronous>, transform_indices = @transform_3, window_bounds = array<i64: 8, 16>}, {pipeline_mode = #tpu.pipeline_mode<synchronous>, transform_indices = @transform_4, window_bounds = array<i64: 8, 1>}, {pipeline_mode = #tpu.pipeline_mode<synchronous>, transform_indices = @transform_5, window_bounds = array<i64: 16, 8>}, {pipeline_mode = #tpu.pipeline_mode<synchronous>, transform_indices = @transform_6, window_bounds = array<i64: 16, 1>}, {pipeline_mode = #tpu.pipeline_mode<synchronous>, transform_indices = @transform_7, window_bounds = array<i64: 1, 32>}, {pipeline_mode = #tpu.pipeline_mode<synchronous>, transform_indices = @transform_8, window_bounds = array<i64: 1, 32>}, {pipeline_mode = #tpu.pipeline_mode<synchronous>, transform_indices = @transform_9, window_bounds = array<i64: 32, 64>}, {pipeline_mode = #tpu.pipeline_mode<synchronous>, transform_indices = @transform_10, window_bounds = array<i64: 1, 64>}, {pipeline_mode = #tpu.pipeline_mode<synchronous>, transform_indices = @transform_11, window_bounds = array<i64: 64, 32>}, {pipeline_mode = #tpu.pipeline_mode<synchronous>, transform_indices = @transform_12, window_bounds = array<i64: 1, 32>}, {transform_indices = @transform_13, window_bounds = array<i64: 2, 16, 32>}]} {
    %c0 = arith.constant 0 : index
    %c0_0 = arith.constant 0 : index
    %c0_1 = arith.constant 0 : index
    %0 = vector.load %arg1[%c0, %c0_0, %c0_1] : memref<2x16x32xf32, #tpu.memory_space<vmem>>, vector<2x16x32xf32>
    %c0_2 = arith.constant 0 : index
    %c0_3 = arith.constant 0 : index
    %1 = vector.load %arg2[%c0_2, %c0_3] : memref<1x32xf32, #tpu.memory_space<vmem>>, vector<1x32xf32>
    %2 = vector.shape_cast %1 : vector<1x32xf32> to vector<32xf32>
    %c0_4 = arith.constant 0 : index
    %c0_5 = arith.constant 0 : index
    %3 = vector.load %arg3[%c0_4, %c0_5] : memref<1x32xf32, #tpu.memory_space<vmem>>, vector<1x32xf32>
    %4 = vector.shape_cast %3 : vector<1x32xf32> to vector<32xf32>
    %cst = arith.constant dense<0.000000e+00> : vector<2x16xf32>
    %5 = vector.multi_reduction <add>, %0, %cst [2] : vector<2x16x32xf32> to vector<2x16xf32>
    %6 = vector.shape_cast %5 : vector<2x16xf32> to vector<2x16x1xf32>
    %cst_6 = arith.constant 3.200000e+01 : f32
    %7 = vector.broadcast %cst_6 : f32 to vector<2x16x1xf32>
    %8 = arith.divf %6, %7 : vector<2x16x1xf32>
    %9 = vector.broadcast %8 : vector<2x16x1xf32> to vector<2x16x32xf32>
    %10 = arith.subf %0, %9 : vector<2x16x32xf32>
    %11 = arith.mulf %10, %10 : vector<2x16x32xf32>
    %cst_7 = arith.constant dense<0.000000e+00> : vector<2x16xf32>
    %12 = vector.multi_reduction <add>, %11, %cst_7 [2] : vector<2x16x32xf32> to vector<2x16xf32>
    %13 = vector.shape_cast %12 : vector<2x16xf32> to vector<2x16x1xf32>
    %cst_8 = arith.constant 3.200000e+01 : f32
    %14 = vector.broadcast %cst_8 : f32 to vector<2x16x1xf32>
    %15 = arith.divf %13, %14 : vector<2x16x1xf32>
    %cst_9 = arith.constant 9.99999974E-6 : f32
    %16 = vector.broadcast %cst_9 : f32 to vector<2x16x1xf32>
    %17 = arith.addf %15, %16 : vector<2x16x1xf32>
    %18 = math.rsqrt %17 : vector<2x16x1xf32>
    %19 = vector.shape_cast %2 : vector<32xf32> to vector<1x1x32xf32>
    %20 = vector.broadcast %18 : vector<2x16x1xf32> to vector<2x16x32xf32>
    %21 = vector.broadcast %19 : vector<1x1x32xf32> to vector<2x16x32xf32>
    %22 = arith.mulf %20, %21 : vector<2x16x32xf32>
    %23 = arith.mulf %10, %22 : vector<2x16x32xf32>
    %24 = vector.shape_cast %4 : vector<32xf32> to vector<1x1x32xf32>
    %25 = vector.broadcast %24 : vector<1x1x32xf32> to vector<2x16x32xf32>
    %26 = arith.addf %23, %25 : vector<2x16x32xf32>
    %c0_10 = arith.constant 0 : index
    %c0_11 = arith.constant 0 : index
    %27 = vector.load %arg4[%c0_10, %c0_11] : memref<8x16xf32, #tpu.memory_space<vmem>>, vector<8x16xf32>
    %28 = vector.shape_cast %27 : vector<8x16xf32> to vector<1x8x16xf32>
    %29 = vector.broadcast %28 : vector<1x8x16xf32> to vector<2x8x16xf32>
    "tpu.trace_start"() <{level = 10 : i32, message = "btn,bnd->btd"}> : () -> ()
    %cst_12 = arith.constant dense<0.000000e+00> : vector<2x8x32xf32>
    %30 = tpu.matmul %29, %26, %cst_12 {dimension_numbers = #tpu.dot_dimension_numbers<[2], [1], [1], [2], [0, 0, 0, 1, 1, 2], [0], [0]>} : vector<2x8x16xf32>, vector<2x16x32xf32>, vector<2x8x32xf32> -> vector<2x8x32xf32>
    "tpu.trace_stop"() : () -> ()
    %c0_13 = arith.constant 0 : index
    %c0_14 = arith.constant 0 : index
    %31 = vector.load %arg5[%c0_13, %c0_14] : memref<8x1xf32, #tpu.memory_space<vmem>>, vector<8x1xf32>
    %32 = vector.shape_cast %31 : vector<8x1xf32> to vector<1x8x1xf32>
    %33 = vector.broadcast %32 : vector<1x8x1xf32> to vector<2x8x32xf32>
    %34 = arith.addf %30, %33 : vector<2x8x32xf32>
    %cst_15 = arith.constant 5.000000e-01 : f32
    %35 = vector.broadcast %cst_15 : f32 to vector<2x8x32xf32>
    %36 = arith.mulf %35, %34 : vector<2x8x32xf32>
    %cst_16 = arith.constant 0.707106769 : f32
    %37 = vector.broadcast %cst_16 : f32 to vector<2x8x32xf32>
    %38 = arith.mulf %34, %37 : vector<2x8x32xf32>
    %39 = math.erf %38 : vector<2x8x32xf32>
    %cst_17 = arith.constant 1.000000e+00 : f32
    %40 = vector.broadcast %cst_17 : f32 to vector<2x8x32xf32>
    %41 = arith.addf %40, %39 : vector<2x8x32xf32>
    %42 = arith.mulf %36, %41 : vector<2x8x32xf32>
    %c0_18 = arith.constant 0 : index
    %c0_19 = arith.constant 0 : index
    %43 = vector.load %arg6[%c0_18, %c0_19] : memref<16x8xf32, #tpu.memory_space<vmem>>, vector<16x8xf32>
    %44 = vector.shape_cast %43 : vector<16x8xf32> to vector<1x16x8xf32>
    %45 = vector.broadcast %44 : vector<1x16x8xf32> to vector<2x16x8xf32>
    "tpu.trace_start"() <{level = 10 : i32, message = "bnt,btd->bnd"}> : () -> ()
    %cst_20 = arith.constant dense<0.000000e+00> : vector<2x16x32xf32>
    %46 = tpu.matmul %45, %42, %cst_20 {dimension_numbers = #tpu.dot_dimension_numbers<[2], [1], [1], [2], [0, 0, 0, 1, 1, 2], [0], [0]>} : vector<2x16x8xf32>, vector<2x8x32xf32>, vector<2x16x32xf32> -> vector<2x16x32xf32>
    "tpu.trace_stop"() : () -> ()
    %c0_21 = arith.constant 0 : index
    %c0_22 = arith.constant 0 : index
    %47 = vector.load %arg7[%c0_21, %c0_22] : memref<16x1xf32, #tpu.memory_space<vmem>>, vector<16x1xf32>
    %48 = vector.shape_cast %47 : vector<16x1xf32> to vector<1x16x1xf32>
    %49 = vector.broadcast %48 : vector<1x16x1xf32> to vector<2x16x32xf32>
    %50 = arith.addf %46, %49 : vector<2x16x32xf32>
    %51 = arith.addf %0, %50 : vector<2x16x32xf32>
    %c0_23 = arith.constant 0 : index
    %c0_24 = arith.constant 0 : index
    %52 = vector.load %arg8[%c0_23, %c0_24] : memref<1x32xf32, #tpu.memory_space<vmem>>, vector<1x32xf32>
    %53 = vector.shape_cast %52 : vector<1x32xf32> to vector<32xf32>
    %c0_25 = arith.constant 0 : index
    %c0_26 = arith.constant 0 : index
    %54 = vector.load %arg9[%c0_25, %c0_26] : memref<1x32xf32, #tpu.memory_space<vmem>>, vector<1x32xf32>
    %55 = vector.shape_cast %54 : vector<1x32xf32> to vector<32xf32>
    %cst_27 = arith.constant dense<0.000000e+00> : vector<2x16xf32>
    %56 = vector.multi_reduction <add>, %51, %cst_27 [2] : vector<2x16x32xf32> to vector<2x16xf32>
    %57 = vector.shape_cast %56 : vector<2x16xf32> to vector<2x16x1xf32>
    %cst_28 = arith.constant 3.200000e+01 : f32
    %58 = vector.broadcast %cst_28 : f32 to vector<2x16x1xf32>
    %59 = arith.divf %57, %58 : vector<2x16x1xf32>
    %60 = vector.broadcast %59 : vector<2x16x1xf32> to vector<2x16x32xf32>
    %61 = arith.subf %51, %60 : vector<2x16x32xf32>
    %62 = arith.mulf %61, %61 : vector<2x16x32xf32>
    %cst_29 = arith.constant dense<0.000000e+00> : vector<2x16xf32>
    %63 = vector.multi_reduction <add>, %62, %cst_29 [2] : vector<2x16x32xf32> to vector<2x16xf32>
    %64 = vector.shape_cast %63 : vector<2x16xf32> to vector<2x16x1xf32>
    %cst_30 = arith.constant 3.200000e+01 : f32
    %65 = vector.broadcast %cst_30 : f32 to vector<2x16x1xf32>
    %66 = arith.divf %64, %65 : vector<2x16x1xf32>
    %cst_31 = arith.constant 9.99999974E-6 : f32
    %67 = vector.broadcast %cst_31 : f32 to vector<2x16x1xf32>
    %68 = arith.addf %66, %67 : vector<2x16x1xf32>
    %69 = math.rsqrt %68 : vector<2x16x1xf32>
    %70 = vector.shape_cast %53 : vector<32xf32> to vector<1x1x32xf32>
    %71 = vector.broadcast %69 : vector<2x16x1xf32> to vector<2x16x32xf32>
    %72 = vector.broadcast %70 : vector<1x1x32xf32> to vector<2x16x32xf32>
    %73 = arith.mulf %71, %72 : vector<2x16x32xf32>
    %74 = arith.mulf %61, %73 : vector<2x16x32xf32>
    %75 = vector.shape_cast %55 : vector<32xf32> to vector<1x1x32xf32>
    %76 = vector.broadcast %75 : vector<1x1x32xf32> to vector<2x16x32xf32>
    %77 = arith.addf %74, %76 : vector<2x16x32xf32>
    %78 = vector.shape_cast %77 : vector<2x16x32xf32> to vector<32x32xf32>
    %c0_32 = arith.constant 0 : index
    %c0_33 = arith.constant 0 : index
    %79 = vector.load %arg10[%c0_32, %c0_33] : memref<32x64xf32, #tpu.memory_space<vmem>>, vector<32x64xf32>
    %cst_34 = arith.constant dense<0.000000e+00> : vector<32x64xf32>
    %80 = tpu.matmul %78, %79, %cst_34 {dimension_numbers = #tpu.dot_dimension_numbers<[1], [0], [0], [1], [0, 0, 1, 1], [], []>} : vector<32x32xf32>, vector<32x64xf32>, vector<32x64xf32> -> vector<32x64xf32>
    %c0_35 = arith.constant 0 : index
    %c0_36 = arith.constant 0 : index
    %81 = vector.load %arg11[%c0_35, %c0_36] : memref<1x64xf32, #tpu.memory_space<vmem>>, vector<1x64xf32>
    %82 = vector.broadcast %81 : vector<1x64xf32> to vector<32x64xf32>
    %83 = arith.addf %80, %82 : vector<32x64xf32>
    %cst_37 = arith.constant 5.000000e-01 : f32
    %84 = vector.broadcast %cst_37 : f32 to vector<32x64xf32>
    %85 = arith.mulf %84, %83 : vector<32x64xf32>
    %cst_38 = arith.constant 0.707106769 : f32
    %86 = vector.broadcast %cst_38 : f32 to vector<32x64xf32>
    %87 = arith.mulf %83, %86 : vector<32x64xf32>
    %88 = math.erf %87 : vector<32x64xf32>
    %cst_39 = arith.constant 1.000000e+00 : f32
    %89 = vector.broadcast %cst_39 : f32 to vector<32x64xf32>
    %90 = arith.addf %89, %88 : vector<32x64xf32>
    %91 = arith.mulf %85, %90 : vector<32x64xf32>
    %c0_40 = arith.constant 0 : index
    %c0_41 = arith.constant 0 : index
    %92 = vector.load %arg12[%c0_40, %c0_41] : memref<64x32xf32, #tpu.memory_space<vmem>>, vector<64x32xf32>
    %cst_42 = arith.constant dense<0.000000e+00> : vector<32x32xf32>
    %93 = tpu.matmul %91, %92, %cst_42 {dimension_numbers = #tpu.dot_dimension_numbers<[1], [0], [0], [1], [0, 0, 1, 1], [], []>} : vector<32x64xf32>, vector<64x32xf32>, vector<32x32xf32> -> vector<32x32xf32>
    %c0_43 = arith.constant 0 : index
    %c0_44 = arith.constant 0 : index
    %94 = vector.load %arg13[%c0_43, %c0_44] : memref<1x32xf32, #tpu.memory_space<vmem>>, vector<1x32xf32>
    %95 = vector.broadcast %94 : vector<1x32xf32> to vector<32x32xf32>
    %96 = arith.addf %93, %95 : vector<32x32xf32>
    %97 = vector.shape_cast %96 : vector<32x32xf32> to vector<2x16x32xf32>
    %98 = arith.addf %51, %97 : vector<2x16x32xf32>
    %c0_45 = arith.constant 0 : index
    %c0_46 = arith.constant 0 : index
    %c0_47 = arith.constant 0 : index
    %99 = vector.load %arg14[%c0_45, %c0_46, %c0_47] : memref<2x16x32xf32, #tpu.memory_space<vmem>>, vector<2x16x32xf32>
    tpu.vector_store %arg14[%c0_45, %c0_46, %c0_47], %98 {strides = array<i32>} : memref<2x16x32xf32, #tpu.memory_space<vmem>>, vector<2x16x32xf32>,
    return
  }
  func.func @transform_0(%arg0: i32) -> (i32, i32, i32) {
    %c0_i32 = arith.constant 0 : i32
    %c0_i32_0 = arith.constant 0 : i32
    %c0_i32_1 = arith.constant 0 : i32
    return %arg0, %c0_i32, %c0_i32_0 : i32, i32, i32
  }
  func.func @transform_1(%arg0: i32) -> (i32, i32) {
    %c0_i32 = arith.constant 0 : i32
    %c0_i32_0 = arith.constant 0 : i32
    %c0_i32_1 = arith.constant 0 : i32
    return %c0_i32, %c0_i32_0 : i32, i32
  }
  func.func @transform_2(%arg0: i32) -> (i32, i32) {
    %c0_i32 = arith.constant 0 : i32
    %c0_i32_0 = arith.constant 0 : i32
    %c0_i32_1 = arith.constant 0 : i32
    return %c0_i32, %c0_i32_0 : i32, i32
  }
  func.func @transform_3(%arg0: i32) -> (i32, i32) {
    %c0_i32 = arith.constant 0 : i32
    %c0_i32_0 = arith.constant 0 : i32
    %c0_i32_1 = arith.constant 0 : i32
    return %c0_i32, %c0_i32_0 : i32, i32
  }
  func.func @transform_4(%arg0: i32) -> (i32, i32) {
    %c0_i32 = arith.constant 0 : i32
    %c0_i32_0 = arith.constant 0 : i32
    %c0_i32_1 = arith.constant 0 : i32
    return %c0_i32, %c0_i32_0 : i32, i32
  }
  func.func @transform_5(%arg0: i32) -> (i32, i32) {
    %c0_i32 = arith.constant 0 : i32
    %c0_i32_0 = arith.constant 0 : i32
    %c0_i32_1 = arith.constant 0 : i32
    return %c0_i32, %c0_i32_0 : i32, i32
  }
  func.func @transform_6(%arg0: i32) -> (i32, i32) {
    %c0_i32 = arith.constant 0 : i32
    %c0_i32_0 = arith.constant 0 : i32
    %c0_i32_1 = arith.constant 0 : i32
    return %c0_i32, %c0_i32_0 : i32, i32
  }
  func.func @transform_7(%arg0: i32) -> (i32, i32) {
    %c0_i32 = arith.constant 0 : i32
    %c0_i32_0 = arith.constant 0 : i32
    %c0_i32_1 = arith.constant 0 : i32
    return %c0_i32, %c0_i32_0 : i32, i32
  }
  func.func @transform_8(%arg0: i32) -> (i32, i32) {
    %c0_i32 = arith.constant 0 : i32
    %c0_i32_0 = arith.constant 0 : i32
    %c0_i32_1 = arith.constant 0 : i32
    return %c0_i32, %c0_i32_0 : i32, i32
  }
  func.func @transform_9(%arg0: i32) -> (i32, i32) {
    %c0_i32 = arith.constant 0 : i32
    %c0_i32_0 = arith.constant 0 : i32
    %c0_i32_1 = arith.constant 0 : i32
    return %c0_i32, %c0_i32_0 : i32, i32
  }
  func.func @transform_10(%arg0: i32) -> (i32, i32) {
    %c0_i32 = arith.constant 0 : i32
    %c0_i32_0 = arith.constant 0 : i32
    %c0_i32_1 = arith.constant 0 : i32
    return %c0_i32, %c0_i32_0 : i32, i32
  }
  func.func @transform_11(%arg0: i32) -> (i32, i32) {
    %c0_i32 = arith.constant 0 : i32
    %c0_i32_0 = arith.constant 0 : i32
    %c0_i32_1 = arith.constant 0 : i32
    return %c0_i32, %c0_i32_0 : i32, i32
  }
  func.func @transform_12(%arg0: i32) -> (i32, i32) {
    %c0_i32 = arith.constant 0 : i32
    %c0_i32_0 = arith.constant 0 : i32
    %c0_i32_1 = arith.constant 0 : i32
    return %c0_i32, %c0_i32_0 : i32, i32
  }
  func.func @transform_13(%arg0: i32) -> (i32, i32, i32) {
    %c0_i32 = arith.constant 0 : i32
    %c0_i32_0 = arith.constant 0 : i32
    %c0_i32_1 = arith.constant 0 : i32
    return %arg0, %c0_i32, %c0_i32_0 : i32, i32, i32
  }
}

</mosaic_0001>

<bundles_post_ra>
// kernel: mixer_block.1
= control target key start
LH: loop header
LB: loop body
LE: loop exit
PB: predicated region body
PF: predicated region fallthrough
CT: control target
= control target key end

     0   :  { %vm51_vm0 = vcmask 261120   ;;  %s1246_s0 = inlined_call_operand.vmem [shape: f32[2,16,32], index: 0, kind: input, shape index: {}]   ;;  %s1247_s1 = inlined_call_operand.vmem [shape: f32[1,32], index: 1, kind: input, shape index: {}]   ;;  %s1248_s2 = inlined_call_operand.vmem [shape: f32[1,32], index: 2, kind: input, shape index: {}]   ;;  %s1249_s3 = inlined_call_operand.vmem [shape: f32[8,16], index: 3, kind: input, shape index: {}]   ;;  %s1250_s4 = inlined_call_operand.vmem [shape: f32[8,1], index: 4, kind: input, shape index: {}]   ;;  %s1251_s5 = inlined_call_operand.vmem [shape: f32[16,8], index: 5, kind: input, shape index: {}]   ;;  %s1252_s6 = inlined_call_operand.vmem [shape: f32[16,1], index: 6, kind: input, shape index: {}]   ;;  %s1253_s7 = inlined_call_operand.vmem [shape: f32[1,32], index: 7, kind: input, shape index: {}]   ;;  %s1254_s8 = inlined_call_operand.vmem [shape: f32[1,32], index: 8, kind: input, shape index: {}]   ;;  %s1255_s9 = inlined_call_operand.vmem [shape: f32[32,64], index: 9, kind: input, shape index: {}]   ;;  %s1256_s10 = inlined_call_operand.vmem [shape: f32[1,64], index: 10, kind: input, shape index: {}]   ;;  %s1257_s11 = inlined_call_operand.vmem [shape: f32[64,32], index: 11, kind: input, shape index: {}]   ;;  %s1258_s12 = inlined_call_operand.vmem [shape: f32[1,32], index: 12, kind: input, shape index: {}]   ;;  %s1259_s13 = inlined_call_operand.hbm [shape: f32[2,16,32], index: 13, kind: output, shape index: {}]  }
   0x1   :  { %v1083_v0 = vld [vmem:[%s1246_s0] sm:$0xff]  ;;  %v1088_v1 = vld [vmem:[%s1246_s0 + $0x10] sm:$0xff]  ;;  %v1093_v2 = vld [vmem:[%s1246_s0 + $0x8] sm:$0xff] }
   0x2   :  { %v52_v3 = vsel %vm51_vm0, %v1083_v0, 0.0  ;;  %v58_v4 = vsel %vm51_vm0, %v1088_v1, 0.0  ;;  %v1102_v5 = vld [vmem:[%s1246_s0 + $0x18] sm:$0xff] }
   0x3   :  { %18 = vsyncpa [#allocation3], 0  ;;  %53 = vadd.xlane.f32.xlu0 %v52_v3  ;;  %59 = vadd.xlane.f32.xlu1 %v58_v4  ;;  %v55_v6 = vsel %vm51_vm0, %v1093_v2, 0.0  ;;  %v61_v7 = vsel %vm51_vm0, %v1102_v5, 0.0  ;;  %v1003_v28 = vmov 0.0|0.0   ;;  %vm1004_vm1 = vmmov 0  }
   0x4   :  { %912 = vmatprep.subr.bf16.mxu0 %v1003_v28  ;;  %v1005_v29 = vmov 0.0   ;;  %v126_v30 = vld [vmem:[%s1250_s4] sm:$0xff]  ;;  %v1006_v31 = vmov 0   ;;  %vm132_vm2 = vcmask 130048   ;;  %vm300_vm3 = vcmask 64512   ;;  %s1007_s28 = smov [#allocation2]  }
   0x5   :  { %856 = vmatprep.mubr.msk.f32.mxu0 %vm1004_vm1, %v1005_v29  ;;  %949 = vset.pattern.permute.xlu0 %v1006_v31  ;;  %v800_v44 = vld [vmem:[%s1247_s1] ss:$0 sm:$0xff]  ;;  %vm678_vm4 = vcmask 523264   ;;  %s789_s29 = sshll.u32 %s1007_s28, 4  ;;  %s790_s29 = int_to_ptr.vmem [resolvable:$true] %s789_s29 }
   0x6   :  { %950 = vset.pattern.permute.xlu1 %v1006_v31  ;;  %v801_v51 = vld [vmem:[%s1248_s2] ss:$0 sm:$0xff]  ;;  %p984_p1 = scmp.lt.s32.totalorder %s790_s29, %s790_s29 }
   0x7   :  { %56 = vadd.xlane.f32.xlu0 %v55_v6  ;;  %62 = vadd.xlane.f32.xlu1 %v61_v7  ;;  %v125_v61 = vld [vmem:[%s1249_s3] sm:$0xff]  ;;  %v289_v7 = vld [vmem:[%s1252_s6 + $0x8] sm:$0xff] }
   0x8   :  { %v286_v4 = vld [vmem:[%s1251_s5] sm:$0xff] }
   0x9   :  { %873 = vmatprep.mubr.msk.f32.mxu1 %vm300_vm3, %v286_v4  ;;  %v288_v6 = vld [vmem:[%s1252_s6] sm:$0xff] }
  0x90   :  { %v54_v8 = vpop.xlane.xlu0 %53  ;;  %v60_v9 = vpop.xlane.xlu1 %59 }
  0x91   :  { %v65_v10 = vmul.f32 0.03125, %v54_v8  ;;  %v67_v11 = vmul.f32 0.03125, %v60_v9 }
  0x93   :  { %v69_v12 = vsub.f32 %v1083_v0, %v65_v10  ;;  %v71_v13 = vsub.f32 %v1088_v1, %v67_v11 }
  0x94   :  { %v57_v14 = vpop.xlane.xlu0 %56  ;;  %v63_v15 = vpop.xlane.xlu1 %62 }
  0x95   :  { %v66_v16 = vmul.f32 0.03125, %v57_v14  ;;  %v68_v17 = vmul.f32 0.03125, %v63_v15  ;;  %v73_v18 = vmul.f32 %v69_v12, %v69_v12  ;;  %v75_v19 = vmul.f32 %v71_v13, %v71_v13 }
  0x97   :  { %v70_v20 = vsub.f32 %v1093_v2, %v66_v16  ;;  %v72_v21 = vsub.f32 %v1102_v5, %v68_v17  ;;  %v77_v22 = vsel %vm51_vm0, %v73_v18, 0.0  ;;  %v83_v23 = vsel %vm51_vm0, %v75_v19, 0.0 }
  0x98   :  { %78 = vadd.xlane.f32.xlu0 %v77_v22  ;;  %v287_v22 = vld [vmem:[%s1251_s5 + $0x8] sm:$0xff] }
  0x99   :  { %v74_v24 = vmul.f32 %v70_v20, %v70_v20  ;;  %v76_v25 = vmul.f32 %v72_v21, %v72_v21 }
  0x9b   :  { %v80_v26 = vsel %vm51_vm0, %v74_v24, 0.0  ;;  %v86_v27 = vsel %vm51_vm0, %v76_v25, 0.0 }
  0x9c   :  { %84 = vadd.xlane.f32.xlu0 %v83_v23  ;;  %81 = vadd.xlane.f32.xlu1 %v80_v26 }
  0xa0   :  { %87 = vadd.xlane.f32.xlu1 %v86_v27 }
  0xb1   :  { %292 = vperm.xlu1 %950, %v288_v6  }
  0xb2   :  { %129 = vperm.xlu0 %949, %v126_v30  }
  0xb5   :  { %297 = vperm.xlu1 %950, %v289_v7  }
 0x125   :  { %v79_v32 = vpop.xlane.xlu0 %78 }
 0x126   :  { %v89_v33 = vmul.f32 0.03125, %v79_v32 }
 0x128   :  { %v93_v34 = vadd.f32 1e-05, %v89_v33 }
 0x129   :  { %v82_v35 = vpop.xlane.xlu1 %81  ;;  %v85_v36 = vpop.xlane.xlu0 %84 }
 0x12a   :  { %951 = vrsqrt.f32 %v93_v34  ;;  %v90_v37 = vmul.f32 0.03125, %v82_v35  ;;  %v91_v38 = vmul.f32 0.03125, %v85_v36 }
 0x12c   :  { %v94_v39 = vadd.f32 1e-05, %v90_v37  ;;  %v95_v40 = vadd.f32 1e-05, %v91_v38 }
 0x12d   :  { %v88_v41 = vpop.xlane.xlu1 %87 }
 0x12e   :  { %953 = vrsqrt.f32 %v94_v39  ;;  %v92_v42 = vmul.f32 0.03125, %v88_v41 }
 0x12f   :  { %955 = vrsqrt.f32 %v95_v40 }
 0x130   :  { %v96_v43 = vadd.f32 1e-05, %v92_v42 }
 0x131   :  { %v130_v8 = vpop.permute.xlu0 %129  ;;  %v293_v26 = vpop.permute.xlu1 %292 }
 0x132   :  { %957 = vrsqrt.f32 %v96_v43 }
 0x134   :  { %v952_v45 = vpop.eup %951 }
 0x135   :  { %v107_v46 = vmul.f32 %v952_v45, %v800_v44  ;;  %v298_v27 = vpop.permute.xlu1 %297 }
 0x137   :  { %v111_v50 = vmul.f32 %v107_v46, %v69_v12 }
 0x138   :  { %v954_v47 = vpop.eup %953 }
 0x139   :  { %v956_v48 = vpop.eup %955  ;;  %v108_v49 = vmul.f32 %v954_v47, %v800_v44  ;;  %v121_v55 = vadd.f32 %v801_v51, %v111_v50 }
 0x13a   :  { %v109_v52 = vmul.f32 %v956_v48, %v800_v44 }
 0x13b   :  { %v112_v53 = vmul.f32 %v108_v49, %v70_v20 }
 0x13c   :  { %v958_v54 = vpop.eup %957  ;;  %v113_v58 = vmul.f32 %v109_v52, %v71_v13 }
 0x13d   :  { %v122_v56 = vadd.f32 %v801_v51, %v112_v53  ;;  %v110_v57 = vmul.f32 %v958_v54, %v800_v44 }
 0x13e   :  { %v123_v62 = vadd.f32 %v801_v51, %v113_v58 }
 0x13f   :  { %v913_v59 = vpack.c.bf16 %v122_v56, %v121_v55  ;;  %v114_v60 = vmul.f32 %v110_v57, %v72_v21 }
 0x141   :  { %914 = vmatpush3.bf16.msra.mxu0 %v913_v59  ;;  %v124_v63 = vadd.f32 %v801_v51, %v114_v60  ;;  %v535_v60 = vld [vmem:[%s1255_s9] sm:$0xff] }
 0x142   :  { %915 = vmatprep.subr.bf16.mxu0 %v1003_v28 }
 0x143   :  { %v916_v3 = vpack.c.bf16 %v124_v63, %v123_v62  ;;  %v537_v62 = vld [vmem:[%s1255_s9 + $0x10] sm:$0xff] }
 0x144   :  { %857 = vmatmul.mubr.msk.f32.vlgmr.msra.gmra.mrb[0].mxu0 %vm132_vm2, %v125_v61 }
 0x145   :  { %917 = vmatpush3.bf16.msra.mxu0 %v916_v3  ;;  %863 = vmatprep.mubr.msk.f32.mxu0 %vm1004_vm1, %v1005_v29  ;;  %v538_v3 = vld [vmem:[%s1255_s9 + $0x18] sm:$0xff] }
 0x148   :  { %864 = vmatmul.mubr.msk.f32.vlgmr.msra.gmra.mrb[2].mxu0 %vm132_vm2, %v125_v61  ;;  %v536_v61 = vld [vmem:[%s1255_s9 + $0x8] sm:$0xff] }
 0x149   :  { %868 = vmatprep.mubr.msk.f32.mxu0 %vm300_vm3, %v286_v4  ;;  %v918_v63 = vpack.c.bf16 %v536_v61, %v535_v60  ;;  %v922_v4 = vpack.c.bf16 %v538_v3, %v537_v62 }
 0x217   :  { %v202_v9 = vpop.f32.mrb[0].mxu0 }
 0x218   :  { %v203_v10 = vadd.f32 %v202_v9, %v130_v8  ;;  %v858_v11 = vpop.f32.mrb[1].mxu0 }
 0x21a   :  { %v278_v12 = vmul.f32 0.70710677, %v203_v10  ;;  %v276_v18 = vmul.f32 0.5, %v203_v10 }
 0x21b   :  { %v272_v13 = vpop.f32.mrb[2].mxu0 }
 0x21c   :  { %959 = verf.f32 %v278_v12  ;;  %v273_v14 = vadd.f32 %v272_v13, %v130_v8  ;;  %v865_v15 = vpop.f32.mrb[3].mxu0 }
 0x21e   :  { %v279_v16 = vmul.f32 0.70710677, %v273_v14  ;;  %v277_v23 = vmul.f32 0.5, %v273_v14 }
 0x220   :  { %961 = verf.f32 %v279_v16 }
 0x226   :  { %v960_v17 = vpop.eup %959 }
 0x227   :  { %v282_v19 = vadd.f32 1.0, %v960_v17 }
 0x229   :  { %v284_v20 = vmul.f32 %v282_v19, %v276_v18  ;;  %v808_v18 = vld [vmem:[%s1253_s7] ss:$0 sm:$0xff] }
 0x22a   :  { %v962_v21 = vpop.eup %961 }
 0x22b   :  { %866 = vmatprep.subr.mxu0 %v284_v20  ;;  %v283_v24 = vadd.f32 1.0, %v962_v21 }
 0x22c   :  { %867 = vmatpush3.msra.mxu0 %v284_v20 }
 0x22d   :  { %869 = vmatmul.mubr.msk.f32.vlgmr.msra.gmra.mrb[4].mxu0 %vm300_vm3, %v287_v22  ;;  %v285_v25 = vmul.f32 %v283_v24, %v277_v23  ;;  %919 = vmatprep.subr.bf16.mxu0 %v918_v63  ;;  %v809_v24 = vld [vmem:[%s1254_s8] ss:$0 sm:$0xff] }
 0x22e   :  { %921 = vmatpush3.bf16.msra.mxu0 %v918_v63 }
 0x22f   :  { %871 = vmatprep.subr.mxu1 %v285_v25  ;;  %923 = vmatprep.subr.bf16.mxu0 %v922_v4 }
 0x230   :  { %872 = vmatpush3.msra.mxu1 %v285_v25 }
 0x231   :  { %874 = vmatmul.mubr.msk.f32.vlgmr.msra.gmra.mrb[0].mxu1 %vm300_vm3, %v287_v22 }
 0x232   :  { %925 = vmatpush3.bf16.msra.mxu0 %v922_v4 }
 0x300   :  { %v870_v28 = vpop.f32.mrb[4].mxu0 }
 0x301   :  { %v379_v29 = vadd.f32 %v870_v28, %v298_v27  ;;  %v373_v30 = vpop.f32.mrb[5].mxu0 }
 0x302   :  { %v374_v31 = vadd.f32 %v373_v30, %v293_v26 }
 0x303   :  { %v1147_v32 = vadd.f32 %v379_v29, %v1093_v2 }
 0x304   :  { %v1150_v33 = vadd.f32 %v374_v31, %v1083_v0  ;;  %v875_v34 = vpop.f32.mrb[0].mxu1 }
 0x305   :  { %v448_v35 = vpop.f32.mrb[1].mxu1  ;;  %v466_v36 = vsel %vm51_vm0, %v1147_v32, 0.0  ;;  %v454_v37 = vadd.f32 %v875_v34, %v298_v27 }
 0x306   :  { %v449_v38 = vadd.f32 %v448_v35, %v293_v26  ;;  %467 = vadd.xlane.f32.xlu0 %v466_v36  ;;  %v463_v39 = vsel %vm51_vm0, %v1150_v33, 0.0 }
 0x307   :  { %464 = vadd.xlane.f32.xlu1 %v463_v39  ;;  %v1160_v2 = vadd.f32 %v454_v37, %v1102_v5  ;;  %v664_v39 = vld [vmem:[%s1257_s11 + $0x8] sm:$0xff] }
 0x308   :  { %v1157_v40 = vadd.f32 %v449_v38, %v1088_v1  ;;  %v663_v38 = vld [vmem:[%s1257_s11] sm:$0xff] }
 0x309   :  { %v472_v41 = vsel %vm51_vm0, %v1160_v2, 0.0 }
 0x30a   :  { %v469_v0 = vsel %vm51_vm0, %v1157_v40, 0.0 }
 0x30b   :  { %470 = vadd.xlane.f32.xlu1 %v469_v0  ;;  %v926_v0 = vpack.c.bf16 %v664_v39, %v663_v38 }
 0x30d   :  { %927 = vmatprep.subr.bf16.mxu1 %v926_v0 }
 0x30e   :  { %929 = vmatpush3.bf16.msra.mxu1 %v926_v0 }
 0x30f   :  { %473 = vadd.xlane.f32.xlu1 %v472_v41  ;;  %v665_v41 = vld [vmem:[%s1257_s11 + $0x10] sm:$0xff] }
 0x393   :  { %v468_v42 = vpop.xlane.xlu0 %467 }
 0x394   :  { %v476_v43 = vmul.f32 0.03125, %v468_v42  ;;  %v465_v44 = vpop.xlane.xlu1 %464  ;;  %v666_v42 = vld [vmem:[%s1257_s11 + $0x18] sm:$0xff] }
 0x395   :  { %v475_v45 = vmul.f32 0.03125, %v465_v44  ;;  %v667_v44 = vld [vmem:[%s1257_s11 + $0x20] sm:$0xff] }
 0x396   :  { %v480_v46 = vsub.f32 %v1147_v32, %v476_v43  ;;  %v930_v43 = vpack.c.bf16 %v666_v42, %v665_v41 }
 0x397   :  { %v479_v1 = vsub.f32 %v1150_v33, %v475_v45  ;;  %v668_v45 = vld [vmem:[%s1257_s11 + $0x28] sm:$0xff] }
 0x398   :  { %v471_v47 = vpop.xlane.xlu1 %470  ;;  %v484_v48 = vmul.f32 %v480_v46, %v480_v46  ;;  %931 = vmatprep.subr.bf16.mxu1 %v930_v43 }
 0x399   :  { %v477_v5 = vmul.f32 0.03125, %v471_v47  ;;  %v483_v50 = vmul.f32 %v479_v1, %v479_v1  ;;  %933 = vmatpush3.bf16.msra.mxu1 %v930_v43  ;;  %v670_v47 = vld [vmem:[%s1257_s11 + $0x38] sm:$0xff] }
 0x39a   :  { %v490_v49 = vsel %vm51_vm0, %v484_v48, 0.0 }
 0x39b   :  { %v481_v51 = vsub.f32 %v1157_v40, %v477_v5  ;;  %491 = vadd.xlane.f32.xlu1 %v490_v49  ;;  %v487_v54 = vsel %vm51_vm0, %v483_v50, 0.0  ;;  %v810_v5 = vld [vmem:[%s1256_s10] ss:$0 sm:$0xff] }
 0x39c   :  { %v474_v52 = vpop.xlane.xlu1 %473 }
 0x39d   :  { %v478_v53 = vmul.f32 0.03125, %v474_v52  ;;  %v485_v55 = vmul.f32 %v481_v51, %v481_v51 }
 0x39f   :  { %v482_v56 = vsub.f32 %v1160_v2, %v478_v53  ;;  %488 = vadd.xlane.f32.xlu1 %v487_v54  ;;  %v493_v58 = vsel %vm51_vm0, %v485_v55, 0.0 }
 0x3a1   :  { %v486_v57 = vmul.f32 %v482_v56, %v482_v56 }
 0x3a3   :  { %494 = vadd.xlane.f32.xlu1 %v493_v58  ;;  %v496_v59 = vsel %vm51_vm0, %v486_v57, 0.0 }
 0x3a4   :  { %497 = vadd.xlane.f32.xlu0 %v496_v59 }
 0x428   :  { %v492_v6 = vpop.xlane.xlu1 %491 }
 0x429   :  { %v500_v7 = vmul.f32 0.03125, %v492_v6 }
 0x42b   :  { %v504_v8 = vadd.f32 1e-05, %v500_v7 }
 0x42c   :  { %v489_v9 = vpop.xlane.xlu1 %488 }
 0x42d   :  { %963 = vrsqrt.f32 %v504_v8  ;;  %v499_v10 = vmul.f32 0.03125, %v489_v9 }
 0x42f   :  { %v503_v11 = vadd.f32 1e-05, %v499_v10 }
 0x430   :  { %v495_v12 = vpop.xlane.xlu1 %494 }
 0x431   :  { %965 = vrsqrt.f32 %v503_v11  ;;  %v501_v13 = vmul.f32 0.03125, %v495_v12  ;;  %v498_v14 = vpop.xlane.xlu0 %497 }
 0x432   :  { %v502_v15 = vmul.f32 0.03125, %v498_v14 }
 0x433   :  { %v505_v16 = vadd.f32 1e-05, %v501_v13 }
 0x434   :  { %v506_v17 = vadd.f32 1e-05, %v502_v15 }
 0x435   :  { %967 = vrsqrt.f32 %v505_v16 }
 0x436   :  { %969 = vrsqrt.f32 %v506_v17  ;;  %v815_v17 = vld [vmem:[%s1258_s12] ss:$0 sm:$0xff]  ;;  %s979_s12 = scalar_lea.vmem %s790_s29, 512 }
 0x437   :  { %v964_v19 = vpop.eup %963  ;;  %p980_p0 = scmp.ne.s32.totalorder %s790_s29, %s979_s12  ;;  %p985_p2 = scmp.lt.s32.totalorder %s979_s12, %s979_s12 }
 0x438   :  { %v518_v20 = vmul.f32 %v964_v19, %v808_v18 }
 0x439   :  { %p986_p3 = por %p985_p2, %p984_p1 }
 0x43a   :  { %v522_v23 = vmul.f32 %v518_v20, %v480_v46  ;;  %v934_v46 = vpack.c.bf16 %v668_v45, %v667_v44 }
 0x43b   :  { %v966_v21 = vpop.eup %965  ;;  %p987_p4 = pnand %p986_p3, %p980_p0 }
 0x43c   :  { %v517_v22 = vmul.f32 %v966_v21, %v808_v18  ;;  %v532_v30 = vadd.f32 %v809_v24, %v522_v23  ;;  %935 = vmatprep.subr.bf16.mxu1 %v934_v46 }
 0x43d   :  { %937 = vmatpush3.bf16.msra.mxu1 %v934_v46 }
 0x43e   :  { %v521_v25 = vmul.f32 %v517_v22, %v479_v1  ;;  %v669_v1 = vld [vmem:[%s1257_s11 + $0x30] sm:$0xff] }
 0x43f   :  { %v968_v26 = vpop.eup %967  ;;  %v938_v48 = vpack.c.bf16 %v670_v47, %v669_v1 }
 0x440   :  { %v970_v27 = vpop.eup %969  ;;  %v531_v28 = vadd.f32 %v809_v24, %v521_v25  ;;  %v519_v29 = vmul.f32 %v968_v26, %v808_v18 }
 0x441   :  { %v520_v31 = vmul.f32 %v970_v27, %v808_v18  ;;  %939 = vmatprep.subr.bf16.mxu1 %v938_v48 }
 0x442   :  { %884 = vmatprep.mubr.msk.f32.mxu0 %vm51_vm0, %v531_v28  ;;  %v523_v34 = vmul.f32 %v519_v29, %v481_v51  ;;  %941 = vmatpush3.bf16.msra.mxu1 %v938_v48 }
 0x443   :  { %885 = vmatmul.mubr.msk.f32.vlgmr.msra.gmra.mrb[6].mxu0 %vm51_vm0, %v532_v30  ;;  %v524_v35 = vmul.f32 %v520_v31, %v482_v56 }
 0x444   :  { %v533_v36 = vadd.f32 %v809_v24, %v523_v34 }
 0x445   :  { %v534_v37 = vadd.f32 %v809_v24, %v524_v35 }
 0x446   :  { %887 = vmatprep.mubr.msk.f32.mxu0 %vm51_vm0, %v533_v36 }
 0x447   :  { %888 = vmatmul.mubr.msk.f32.gmra.mrb[8].mxu0 %vm51_vm0, %v534_v37 }
 0x516   :  { %v886_v49 = vpop.f32.mrb[6].mxu0 }
 0x517   :  { %v630_v50 = vadd.f32 %v886_v49, %v810_v5  ;;  %v624_v51 = vpop.f32.mrb[7].mxu0 }
 0x518   :  { %v625_v52 = vadd.f32 %v810_v5, %v624_v51 }
 0x519   :  { %v648_v53 = vmul.f32 0.70710677, %v630_v50  ;;  %v644_v6 = vmul.f32 0.5, %v630_v50 }
 0x51a   :  { %v647_v54 = vmul.f32 0.70710677, %v625_v52  ;;  %v889_v55 = vpop.f32.mrb[8].mxu0  ;;  %v643_v3 = vmul.f32 0.5, %v625_v52 }
 0x51b   :  { %971 = verf.f32 %v648_v53  ;;  %v640_v56 = vadd.f32 %v889_v55, %v810_v5  ;;  %v634_v57 = vpop.f32.mrb[9].mxu0 }
 0x51c   :  { %973 = verf.f32 %v647_v54  ;;  %v635_v58 = vadd.f32 %v810_v5, %v634_v57 }
 0x51d   :  { %v650_v59 = vmul.f32 0.70710677, %v640_v56  ;;  %v646_v14 = vmul.f32 0.5, %v640_v56 }
 0x51e   :  { %v649_v60 = vmul.f32 0.70710677, %v635_v58  ;;  %v645_v12 = vmul.f32 0.5, %v635_v58 }
 0x51f   :  { %975 = verf.f32 %v650_v59 }
 0x520   :  { %977 = verf.f32 %v649_v60 }
 0x525   :  { %v972_v61 = vpop.eup %971 }
 0x526   :  { %v974_v62 = vpop.eup %973  ;;  %v656_v63 = vadd.f32 1.0, %v972_v61 }
 0x527   :  { %v655_v4 = vadd.f32 1.0, %v974_v62 }
 0x528   :  { %v660_v10 = vmul.f32 %v656_v63, %v644_v6 }
 0x529   :  { %v976_v7 = vpop.eup %975  ;;  %v659_v8 = vmul.f32 %v655_v4, %v643_v3 }
 0x52a   :  { %v978_v9 = vpop.eup %977  ;;  %v658_v11 = vadd.f32 1.0, %v976_v7 }
 0x52b   :  { %v657_v13 = vadd.f32 1.0, %v978_v9  ;;  %906 = vmatprep.mubr.msk.f32.mxu1 %vm678_vm4, %v659_v8 }
 0x52c   :  { %907 = vmatmul.mubr.msk.f32.vlgmr.msra.gmra.mrb[2].mxu1 %vm678_vm4, %v660_v10  ;;  %v662_v16 = vmul.f32 %v658_v11, %v646_v14 }
 0x52d   :  { %v661_v15 = vmul.f32 %v657_v13, %v645_v12 }
 0x52f   :  { %909 = vmatprep.mubr.msk.f32.mxu1 %vm678_vm4, %v661_v15 }
 0x530   :  { %910 = vmatmul.mubr.msk.f32.gmra.mrb[4].mxu1 %vm678_vm4, %v662_v16 }
 0x5ff   :  { %v908_v18 = vpop.f32.mrb[2].mxu1 }
 0x600   :  { %v763_v19 = vadd.f32 %v908_v18, %v815_v17  ;;  %v757_v20 = vpop.f32.mrb[3].mxu1 }
 0x601   :  { %v758_v21 = vadd.f32 %v815_v17, %v757_v20 }
 0x602   :  { %v777_v22 = vadd.f32 %v763_v19, %v1147_v32 }
 0x603   :  { %v776_v23 = vadd.f32 %v758_v21, %v1150_v33  ;;  %v911_v24 = vpop.f32.mrb[4].mxu1 }
 0x604   :  { %781 = vst.msk [vmem:[#allocation2 + $0x8] sm:$0xff] %vm51_vm0, %v777_v22  ;;  %v773_v25 = vadd.f32 %v911_v24, %v815_v17  ;;  %v767_v26 = vpop.f32.mrb[5].mxu1 }
 0x605   :  { %780 = vst.msk [vmem:[#allocation2] sm:$0xff] %vm51_vm0, %v776_v23  ;;  %v768_v27 = vadd.f32 %v815_v17, %v767_v26 }
 0x606   :  { %v779_v28 = vadd.f32 %v773_v25, %v1160_v2 }
 0x607   :  { %v778_v29 = vadd.f32 %v768_v27, %v1157_v40 }
 0x608   :  { %783 = vst.msk [vmem:[#allocation2 + $0x18] sm:$0xff] %vm51_vm0, %v779_v28 }
 0x609   :  { %782 = vst.msk [vmem:[#allocation2 + $0x10] sm:$0xff] %vm51_vm0, %v778_v29 }
 0x60a   :  { %990 = shalt.err (!%p987_p4)
}
 0x60b   :  { %s991_s15 = scalar_lea.hbm %s1259_s13, 512 }
 0x60c   :  { %p992_p5 = scmp.ne.s32.totalorder %s1259_s13, %s991_s15  ;;  %p995_p6 = scmp.lt.u32.totalorder %s991_s15, %s1259_s13 }
 0x60e   :  { %p997_p7 = pnand %p995_p6, %p992_p5 }
 0x610   :  { %1000 = shalt.err (!%p997_p7)
}
 0x611   :  { %s1008_s7 = smov 128   ;;  %s1009_s8 = smov 8  }
 0x612   :  { %795 = dma.vmem_to_hbm [thread:$0]  %s790_s29, 512, %s1259_s13, [#allocation3], %s1008_s7, %s1008_s7, %s1009_s8  }
 0x613   :  { %1001 = dma.done.wait [#allocation3], 512  }
 0x614   :  { %1002 = vsyncadd [#allocation3], 4294966784 }
 0x615   :  { %799 = vsyncpa [#allocation3], 1 }

// kernel: mixer_block.1
= control target key start
LH: loop header
LB: loop body
LE: loop exit
PB: predicated region body
PF: predicated region fallthrough
CT: control target
= control target key end

     0   :  { %vm51_vm0 = vcmask 261120   ;;  %s1246_s0 = inlined_call_operand.vmem [shape: f32[2,16,32], index: 0, kind: input, shape index: {}]   ;;  %s1247_s1 = inlined_call_operand.vmem [shape: f32[1,32], index: 1, kind: input, shape index: {}]   ;;  %s1248_s2 = inlined_call_operand.vmem [shape: f32[1,32], index: 2, kind: input, shape index: {}]   ;;  %s1249_s3 = inlined_call_operand.vmem [shape: f32[8,16], index: 3, kind: input, shape index: {}]   ;;  %s1250_s4 = inlined_call_operand.vmem [shape: f32[8,1], index: 4, kind: input, shape index: {}]   ;;  %s1251_s5 = inlined_call_operand.vmem [shape: f32[16,8], index: 5, kind: input, shape index: {}]   ;;  %s1252_s6 = inlined_call_operand.vmem [shape: f32[16,1], index: 6, kind: input, shape index: {}]   ;;  %s1253_s7 = inlined_call_operand.vmem [shape: f32[1,32], index: 7, kind: input, shape index: {}]   ;;  %s1254_s8 = inlined_call_operand.vmem [shape: f32[1,32], index: 8, kind: input, shape index: {}]   ;;  %s1255_s9 = inlined_call_operand.vmem [shape: f32[32,64], index: 9, kind: input, shape index: {}]   ;;  %s1256_s10 = inlined_call_operand.vmem [shape: f32[1,64], index: 10, kind: input, shape index: {}]   ;;  %s1257_s11 = inlined_call_operand.vmem [shape: f32[64,32], index: 11, kind: input, shape index: {}]   ;;  %s1258_s12 = inlined_call_operand.vmem [shape: f32[1,32], index: 12, kind: input, shape index: {}]   ;;  %s1259_s13 = inlined_call_operand.hbm [shape: f32[2,16,32], index: 13, kind: output, shape index: {}]  }
   0x1   :  { %v1083_v0 = vld [vmem:[%s1246_s0] sm:$0xff]  ;;  %v1088_v1 = vld [vmem:[%s1246_s0 + $0x10] sm:$0xff]  ;;  %v1093_v2 = vld [vmem:[%s1246_s0 + $0x8] sm:$0xff] }
   0x2   :  { %v52_v3 = vsel %vm51_vm0, %v1083_v0, 0.0  ;;  %v58_v4 = vsel %vm51_vm0, %v1088_v1, 0.0  ;;  %v1102_v5 = vld [vmem:[%s1246_s0 + $0x18] sm:$0xff] }
   0x3   :  { %18 = vsyncpa [#allocation3], 0  ;;  %53 = vadd.xlane.f32.xlu0 %v52_v3  ;;  %59 = vadd.xlane.f32.xlu1 %v58_v4  ;;  %v55_v6 = vsel %vm51_vm0, %v1093_v2, 0.0  ;;  %v61_v7 = vsel %vm51_vm0, %v1102_v5, 0.0  ;;  %v1003_v28 = vmov 0.0|0.0   ;;  %vm1004_vm1 = vmmov 0  }
   0x4   :  { %912 = vmatprep.subr.bf16.mxu0 %v1003_v28  ;;  %v1005_v29 = vmov 0.0   ;;  %v126_v30 = vld [vmem:[%s1250_s4] sm:$0xff]  ;;  %v1006_v31 = vmov 0   ;;  %vm132_vm2 = vcmask 130048   ;;  %vm300_vm3 = vcmask 64512   ;;  %s1007_s28 = smov [#allocation2]  }
   0x5   :  { %856 = vmatprep.mubr.msk.f32.mxu0 %vm1004_vm1, %v1005_v29  ;;  %949 = vset.pattern.permute.xlu0 %v1006_v31  ;;  %v800_v44 = vld [vmem:[%s1247_s1] ss:$0 sm:$0xff]  ;;  %vm678_vm4 = vcmask 523264   ;;  %s789_s29 = sshll.u32 %s1007_s28, 4  ;;  %s790_s29 = int_to_ptr.vmem [resolvable:$true] %s789_s29 }
   0x6   :  { %950 = vset.pattern.permute.xlu1 %v1006_v31  ;;  %v801_v51 = vld [vmem:[%s1248_s2] ss:$0 sm:$0xff]  ;;  %p984_p1 = scmp.lt.s32.totalorder %s790_s29, %s790_s29 }
   0x7   :  { %56 = vadd.xlane.f32.xlu0 %v55_v6  ;;  %62 = vadd.xlane.f32.xlu1 %v61_v7  ;;  %v125_v61 = vld [vmem:[%s1249_s3] sm:$0xff]  ;;  %v289_v7 = vld [vmem:[%s1252_s6 + $0x8] sm:$0xff] }
   0x8   :  { %v286_v4 = vld [vmem:[%s1251_s5] sm:$0xff] }
   0x9   :  { %873 = vmatprep.mubr.msk.f32.mxu1 %vm300_vm3, %v286_v4  ;;  %v288_v6 = vld [vmem:[%s1252_s6] sm:$0xff] }
  0x90   :  { %v54_v8 = vpop.xlane.xlu0 %53  ;;  %v60_v9 = vpop.xlane.xlu1 %59 }
  0x91   :  { %v65_v10 = vmul.f32 0.03125, %v54_v8  ;;  %v67_v11 = vmul.f32 0.03125, %v60_v9 }
  0x93   :  { %v69_v12 = vsub.f32 %v1083_v0, %v65_v10  ;;  %v71_v13 = vsub.f32 %v1088_v1, %v67_v11 }
  0x94   :  { %v57_v14 = vpop.xlane.xlu0 %56  ;;  %v63_v15 = vpop.xlane.xlu1 %62 }
  0x95   :  { %v66_v16 = vmul.f32 0.03125, %v57_v14  ;;  %v68_v17 = vmul.f32 0.03125, %v63_v15  ;;  %v73_v18 = vmul.f32 %v69_v12, %v69_v12  ;;  %v75_v19 = vmul.f32 %v71_v13, %v71_v13 }
  0x97   :  { %v70_v20 = vsub.f32 %v1093_v2, %v66_v16  ;;  %v72_v21 = vsub.f32 %v1102_v5, %v68_v17  ;;  %v77_v22 = vsel %vm51_vm0, %v73_v18, 0.0  ;;  %v83_v23 = vsel %vm51_vm0, %v75_v19, 0.0 }
  0x98   :  { %78 = vadd.xlane.f32.xlu0 %v77_v22  ;;  %v287_v22 = vld [vmem:[%s1251_s5 + $0x8] sm:$0xff] }
  0x99   :  { %v74_v24 = vmul.f32 %v70_v20, %v70_v20  ;;  %v76_v25 = vmul.f32 %v72_v21, %v72_v21 }
  0x9b   :  { %v80_v26 = vsel %vm51_vm0, %v74_v24, 0.0  ;;  %v86_v27 = vsel %vm51_vm0, %v76_v25, 0.0 }
  0x9c   :  { %84 = vadd.xlane.f32.xlu0 %v83_v23  ;;  %81 = vadd.xlane.f32.xlu1 %v80_v26 }
  0xa0   :  { %87 = vadd.xlane.f32.xlu1 %v86_v27 }
  0xb1   :  { %292 = vperm.xlu1 %950, %v288_v6  }
  0xb2   :  { %129 = vperm.xlu0 %949, %v126_v30  }
  0xb5   :  { %297 = vperm.xlu1 %950, %v289_v7  }
 0x125   :  { %v79_v32 = vpop.xlane.xlu0 %78 }
 0x126   :  { %v89_v33 = vmul.f32 0.03125, %v79_v32 }
 0x128   :  { %v93_v34 = vadd.f32 1e-05, %v89_v33 }
 0x129   :  { %v82_v35 = vpop.xlane.xlu1 %81  ;;  %v85_v36 = vpop.xlane.xlu0 %84 }
 0x12a   :  { %951 = vrsqrt.f32 %v93_v34  ;;  %v90_v37 = vmul.f32 0.03125, %v82_v35  ;;  %v91_v38 = vmul.f32 0.03125, %v85_v36 }
 0x12c   :  { %v94_v39 = vadd.f32 1e-05, %v90_v37  ;;  %v95_v40 = vadd.f32 1e-05, %v91_v38 }
 0x12d   :  { %v88_v41 = vpop.xlane.xlu1 %87 }
 0x12e   :  { %953 = vrsqrt.f32 %v94_v39  ;;  %v92_v42 = vmul.f32 0.03125, %v88_v41 }
 0x12f   :  { %955 = vrsqrt.f32 %v95_v40 }
 0x130   :  { %v96_v43 = vadd.f32 1e-05, %v92_v42 }
 0x131   :  { %v130_v8 = vpop.permute.xlu0 %129  ;;  %v293_v26 = vpop.permute.xlu1 %292 }
 0x132   :  { %957 = vrsqrt.f32 %v96_v43 }
 0x134   :  { %v952_v45 = vpop.eup %951 }
 0x135   :  { %v107_v46 = vmul.f32 %v952_v45, %v800_v44  ;;  %v298_v27 = vpop.permute.xlu1 %297 }
 0x137   :  { %v111_v50 = vmul.f32 %v107_v46, %v69_v12 }
 0x138   :  { %v954_v47 = vpop.eup %953 }
 0x139   :  { %v956_v48 = vpop.eup %955  ;;  %v108_v49 = vmul.f32 %v954_v47, %v800_v44  ;;  %v121_v55 = vadd.f32 %v801_v51, %v111_v50 }
 0x13a   :  { %v109_v52 = vmul.f32 %v956_v48, %v800_v44 }
 0x13b   :  { %v112_v53 = vmul.f32 %v108_v49, %v70_v20 }
 0x13c   :  { %v958_v54 = vpop.eup %957  ;;  %v113_v58 = vmul.f32 %v109_v52, %v71_v13 }
 0x13d   :  { %v122_v56 = vadd.f32 %v801_v51, %v112_v53  ;;  %v110_v57 = vmul.f32 %v958_v54, %v800_v44 }
 0x13e   :  { %v123_v62 = vadd.f32 %v801_v51, %v113_v58 }
 0x13f   :  { %v913_v59 = vpack.c.bf16 %v122_v56, %v121_v55  ;;  %v114_v60 = vmul.f32 %v110_v57, %v72_v21 }
 0x141   :  { %914 = vmatpush3.bf16.msra.mxu0 %v913_v59  ;;  %v124_v63 = vadd.f32 %v801_v51, %v114_v60  ;;  %v535_v60 = vld [vmem:[%s1255_s9] sm:$0xff] }
 0x142   :  { %915 = vmatprep.subr.bf16.mxu0 %v1003_v28 }
 0x143   :  { %v916_v3 = vpack.c.bf16 %v124_v63, %v123_v62  ;;  %v537_v62 = vld [vmem:[%s1255_s9 + $0x10] sm:$0xff] }
 0x144   :  { %857 = vmatmul.mubr.msk.f32.vlgmr.msra.gmra.mrb[0].mxu0 %vm132_vm2, %v125_v61 }
 0x145   :  { %917 = vmatpush3.bf16.msra.mxu0 %v916_v3  ;;  %863 = vmatprep.mubr.msk.f32.mxu0 %vm1004_vm1, %v1005_v29  ;;  %v538_v3 = vld [vmem:[%s1255_s9 + $0x18] sm:$0xff] }
 0x148   :  { %864 = vmatmul.mubr.msk.f32.vlgmr.msra.gmra.mrb[2].mxu0 %vm132_vm2, %v125_v61  ;;  %v536_v61 = vld [vmem:[%s1255_s9 + $0x8] sm:$0xff] }
 0x149   :  { %868 = vmatprep.mubr.msk.f32.mxu0 %vm300_vm3, %v286_v4  ;;  %v918_v63 = vpack.c.bf16 %v536_v61, %v535_v60  ;;  %v922_v4 = vpack.c.bf16 %v538_v3, %v537_v62 }
 0x217   :  { %v202_v9 = vpop.f32.mrb[0].mxu0 }
 0x218   :  { %v203_v10 = vadd.f32 %v202_v9, %v130_v8  ;;  %v858_v11 = vpop.f32.mrb[1].mxu0 }
 0x21a   :  { %v278_v12 = vmul.f32 0.70710677, %v203_v10  ;;  %v276_v18 = vmul.f32 0.5, %v203_v10 }
 0x21b   :  { %v272_v13 = vpop.f32.mrb[2].mxu0 }
 0x21c   :  { %959 = verf.f32 %v278_v12  ;;  %v273_v14 = vadd.f32 %v272_v13, %v130_v8  ;;  %v865_v15 = vpop.f32.mrb[3].mxu0 }
 0x21e   :  { %v279_v16 = vmul.f32 0.70710677, %v273_v14  ;;  %v277_v23 = vmul.f32 0.5, %v273_v14 }
 0x220   :  { %961 = verf.f32 %v279_v16 }
 0x226   :  { %v960_v17 = vpop.eup %959 }
 0x227   :  { %v282_v19 = vadd.f32 1.0, %v960_v17 }
 0x229   :  { %v284_v20 = vmul.f32 %v282_v19, %v276_v18  ;;  %v808_v18 = vld [vmem:[%s1253_s7] ss:$0 sm:$0xff] }
 0x22a   :  { %v962_v21 = vpop.eup %961 }
 0x22b   :  { %866 = vmatprep.subr.mxu0 %v284_v20  ;;  %v283_v24 = vadd.f32 1.0, %v962_v21 }
 0x22c   :  { %867 = vmatpush3.msra.mxu0 %v284_v20 }
 0x22d   :  { %869 = vmatmul.mubr.msk.f32.vlgmr.msra.gmra.mrb[4].mxu0 %vm300_vm3, %v287_v22  ;;  %v285_v25 = vmul.f32 %v283_v24, %v277_v23  ;;  %919 = vmatprep.subr.bf16.mxu0 %v918_v63  ;;  %v809_v24 = vld [vmem:[%s1254_s8] ss:$0 sm:$0xff] }
 0x22e   :  { %921 = vmatpush3.bf16.msra.mxu0 %v918_v63 }
 0x22f   :  { %871 = vmatprep.subr.mxu1 %v285_v25  ;;  %923 = vmatprep.subr.bf16.mxu0 %v922_v4 }
 0x230   :  { %872 = vmatpush3.msra.mxu1 %v285_v25 }
 0x231   :  { %874 = vmatmul.mubr.msk.f32.vlgmr.msra.gmra.mrb[0].mxu1 %vm300_vm3, %v287_v22 }
 0x232   :  { %925 = vmatpush3.bf16.msra.mxu0 %v922_v4 }
 0x300   :  { %v870_v28 = vpop.f32.mrb[4].mxu0 }
 0x301   :  { %v379_v29 = vadd.f32 %v870_v28, %v298_v27  ;;  %v373_v30 = vpop.f32.mrb[5].mxu0 }
 0x302   :  { %v374_v31 = vadd.f32 %v373_v30, %v293_v26 }
 0x303   :  { %v1147_v32 = vadd.f32 %v379_v29, %v1093_v2 }
 0x304   :  { %v1150_v33 = vadd.f32 %v374_v31, %v1083_v0  ;;  %v875_v34 = vpop.f32.mrb[0].mxu1 }
 0x305   :  { %v448_v35 = vpop.f32.mrb[1].mxu1  ;;  %v466_v36 = vsel %vm51_vm0, %v1147_v32, 0.0  ;;  %v454_v37 = vadd.f32 %v875_v34, %v298_v27 }
 0x306   :  { %v449_v38 = vadd.f32 %v448_v35, %v293_v26  ;;  %467 = vadd.xlane.f32.xlu0 %v466_v36  ;;  %v463_v39 = vsel %vm51_vm0, %v1150_v33, 0.0 }
 0x307   :  { %464 = vadd.xlane.f32.xlu1 %v463_v39  ;;  %v1160_v2 = vadd.f32 %v454_v37, %v1102_v5  ;;  %v664_v39 = vld [vmem:[%s1257_s11 + $0x8] sm:$0xff] }
 0x308   :  { %v1157_v40 = vadd.f32 %v449_v38, %v1088_v1  ;;  %v663_v38 = vld [vmem:[%s1257_s11] sm:$0xff] }
 0x309   :  { %v472_v41 = vsel %vm51_vm0, %v1160_v2, 0.0 }
 0x30a   :  { %v469_v0 = vsel %vm51_vm0, %v1157_v40, 0.0 }
 0x30b   :  { %470 = vadd.xlane.f32.xlu1 %v469_v0  ;;  %v926_v0 = vpack.c.bf16 %v664_v39, %v663_v38 }
 0x30d   :  { %927 = vmatprep.subr.bf16.mxu1 %v926_v0 }
 0x30e   :  { %929 = vmatpush3.bf16.msra.mxu1 %v926_v0 }
 0x30f   :  { %473 = vadd.xlane.f32.xlu1 %v472_v41  ;;  %v665_v41 = vld [vmem:[%s1257_s11 + $0x10] sm:$0xff] }
 0x393   :  { %v468_v42 = vpop.xlane.xlu0 %467 }
 0x394   :  { %v476_v43 = vmul.f32 0.03125, %v468_v42  ;;  %v465_v44 = vpop.xlane.xlu1 %464  ;;  %v666_v42 = vld [vmem:[%s1257_s11 + $0x18] sm:$0xff] }
 0x395   :  { %v475_v45 = vmul.f32 0.03125, %v465_v44  ;;  %v667_v44 = vld [vmem:[%s1257_s11 + $0x20] sm:$0xff] }
 0x396   :  { %v480_v46 = vsub.f32 %v1147_v32, %v476_v43  ;;  %v930_v43 = vpack.c.bf16 %v666_v42, %v665_v41 }
 0x397   :  { %v479_v1 = vsub.f32 %v1150_v33, %v475_v45  ;;  %v668_v45 = vld [vmem:[%s1257_s11 + $0x28] sm:$0xff] }
 0x398   :  { %v471_v47 = vpop.xlane.xlu1 %470  ;;  %v484_v48 = vmul.f32 %v480_v46, %v480_v46  ;;  %931 = vmatprep.subr.bf16.mxu1 %v930_v43 }
 0x399   :  { %v477_v5 = vmul.f32 0.03125, %v471_v47  ;;  %v483_v50 = vmul.f32 %v479_v1, %v479_v1  ;;  %933 = vmatpush3.bf16.msra.mxu1 %v930_v43  ;;  %v670_v47 = vld [vmem:[%s1257_s11 + $0x38] sm:$0xff] }
 0x39a   :  { %v490_v49 = vsel %vm51_vm0, %v484_v48, 0.0 }
 0x39b   :  { %v481_v51 = vsub.f32 %v1157_v40, %v477_v5  ;;  %491 = vadd.xlane.f32.xlu1 %v490_v49  ;;  %v487_v54 = vsel %vm51_vm0, %v483_v50, 0.0  ;;  %v810_v5 = vld [vmem:[%s1256_s10] ss:$0 sm:$0xff] }
 0x39c   :  { %v474_v52 = vpop.xlane.xlu1 %473 }
 0x39d   :  { %v478_v53 = vmul.f32 0.03125, %v474_v52  ;;  %v485_v55 = vmul.f32 %v481_v51, %v481_v51 }
 0x39f   :  { %v482_v56 = vsub.f32 %v1160_v2, %v478_v53  ;;  %488 = vadd.xlane.f32.xlu1 %v487_v54  ;;  %v493_v58 = vsel %vm51_vm0, %v485_v55, 0.0 }
 0x3a1   :  { %v486_v57 = vmul.f32 %v482_v56, %v482_v56 }
 0x3a3   :  { %494 = vadd.xlane.f32.xlu1 %v493_v58  ;;  %v496_v59 = vsel %vm51_vm0, %v486_v57, 0.0 }
 0x3a4   :  { %497 = vadd.xlane.f32.xlu0 %v496_v59 }
 0x428   :  { %v492_v6 = vpop.xlane.xlu1 %491 }
 0x429   :  { %v500_v7 = vmul.f32 0.03125, %v492_v6 }
 0x42b   :  { %v504_v8 = vadd.f32 1e-05, %v500_v7 }
 0x42c   :  { %v489_v9 = vpop.xlane.xlu1 %488 }
 0x42d   :  { %963 = vrsqrt.f32 %v504_v8  ;;  %v499_v10 = vmul.f32 0.03125, %v489_v9 }
 0x42f   :  { %v503_v11 = vadd.f32 1e-05, %v499_v10 }
 0x430   :  { %v495_v12 = vpop.xlane.xlu1 %494 }
 0x431   :  { %965 = vrsqrt.f32 %v503_v11  ;;  %v501_v13 = vmul.f32 0.03125, %v495_v12  ;;  %v498_v14 = vpop.xlane.xlu0 %497 }
 0x432   :  { %v502_v15 = vmul.f32 0.03125, %v498_v14 }
 0x433   :  { %v505_v16 = vadd.f32 1e-05, %v501_v13 }
 0x434   :  { %v506_v17 = vadd.f32 1e-05, %v502_v15 }
 0x435   :  { %967 = vrsqrt.f32 %v505_v16 }
 0x436   :  { %969 = vrsqrt.f32 %v506_v17  ;;  %v815_v17 = vld [vmem:[%s1258_s12] ss:$0 sm:$0xff]  ;;  %s979_s12 = scalar_lea.vmem %s790_s29, 512 }
 0x437   :  { %v964_v19 = vpop.eup %963  ;;  %p980_p0 = scmp.ne.s32.totalorder %s790_s29, %s979_s12  ;;  %p985_p2 = scmp.lt.s32.totalorder %s979_s12, %s979_s12 }
 0x438   :  { %v518_v20 = vmul.f32 %v964_v19, %v808_v18 }
 0x439   :  { %p986_p3 = por %p985_p2, %p984_p1 }
 0x43a   :  { %v522_v23 = vmul.f32 %v518_v20, %v480_v46  ;;  %v934_v46 = vpack.c.bf16 %v668_v45, %v667_v44 }
 0x43b   :  { %v966_v21 = vpop.eup %965  ;;  %p987_p4 = pnand %p986_p3, %p980_p0 }
 0x43c   :  { %v517_v22 = vmul.f32 %v966_v21, %v808_v18  ;;  %v532_v30 = vadd.f32 %v809_v24, %v522_v23  ;;  %935 = vmatprep.subr.bf16.mxu1 %v934_v46 }
 0x43d   :  { %937 = vmatpush3.bf16.msra.mxu1 %v934_v46 }
 0x43e   :  { %v521_v25 = vmul.f32 %v517_v22, %v479_v1  ;;  %v669_v1 = vld [vmem:[%s1257_s11 + $0x30] sm:$0xff] }
 0x43f   :  { %v968_v26 = vpop.eup %967  ;;  %v938_v48 = vpack.c.bf16 %v670_v47, %v669_v1 }
 0x440   :  { %v970_v27 = vpop.eup %969  ;;  %v531_v28 = vadd.f32 %v809_v24, %v521_v25  ;;  %v519_v29 = vmul.f32 %v968_v26, %v808_v18 }
 0x441   :  { %v520_v31 = vmul.f32 %v970_v27, %v808_v18  ;;  %939 = vmatprep.subr.bf16.mxu1 %v938_v48 }
 0x442   :  { %884 = vmatprep.mubr.msk.f32.mxu0 %vm51_vm0, %v531_v28  ;;  %v523_v34 = vmul.f32 %v519_v29, %v481_v51  ;;  %941 = vmatpush3.bf16.msra.mxu1 %v938_v48 }
 0x443   :  { %885 = vmatmul.mubr.msk.f32.vlgmr.msra.gmra.mrb[6].mxu0 %vm51_vm0, %v532_v30  ;;  %v524_v35 = vmul.f32 %v520_v31, %v482_v56 }
 0x444   :  { %v533_v36 = vadd.f32 %v809_v24, %v523_v34 }
 0x445   :  { %v534_v37 = vadd.f32 %v809_v24, %v524_v35 }
 0x446   :  { %887 = vmatprep.mubr.msk.f32.mxu0 %vm51_vm0, %v533_v36 }
 0x447   :  { %888 = vmatmul.mubr.msk.f32.gmra.mrb[8].mxu0 %vm51_vm0, %v534_v37 }
 0x516   :  { %v886_v49 = vpop.f32.mrb[6].mxu0 }
 0x517   :  { %v630_v50 = vadd.f32 %v886_v49, %v810_v5  ;;  %v624_v51 = vpop.f32.mrb[7].mxu0 }
 0x518   :  { %v625_v52 = vadd.f32 %v810_v5, %v624_v51 }
 0x519   :  { %v648_v53 = vmul.f32 0.70710677, %v630_v50  ;;  %v644_v6 = vmul.f32 0.5, %v630_v50 }
 0x51a   :  { %v647_v54 = vmul.f32 0.70710677, %v625_v52  ;;  %v889_v55 = vpop.f32.mrb[8].mxu0  ;;  %v643_v3 = vmul.f32 0.5, %v625_v52 }
 0x51b   :  { %971 = verf.f32 %v648_v53  ;;  %v640_v56 = vadd.f32 %v889_v55, %v810_v5  ;;  %v634_v57 = vpop.f32.mrb[9].mxu0 }
 0x51c   :  { %973 = verf.f32 %v647_v54  ;;  %v635_v58 = vadd.f32 %v810_v5, %v634_v57 }
 0x51d   :  { %v650_v59 = vmul.f32 0.70710677, %v640_v56  ;;  %v646_v14 = vmul.f32 0.5, %v640_v56 }
 0x51e   :  { %v649_v60 = vmul.f32 0.70710677, %v635_v58  ;;  %v645_v12 = vmul.f32 0.5, %v635_v58 }
 0x51f   :  { %975 = verf.f32 %v650_v59 }
 0x520   :  { %977 = verf.f32 %v649_v60 }
 0x525   :  { %v972_v61 = vpop.eup %971 }
 0x526   :  { %v974_v62 = vpop.eup %973  ;;  %v656_v63 = vadd.f32 1.0, %v972_v61 }
 0x527   :  { %v655_v4 = vadd.f32 1.0, %v974_v62 }
 0x528   :  { %v660_v10 = vmul.f32 %v656_v63, %v644_v6 }
 0x529   :  { %v976_v7 = vpop.eup %975  ;;  %v659_v8 = vmul.f32 %v655_v4, %v643_v3 }
 0x52a   :  { %v978_v9 = vpop.eup %977  ;;  %v658_v11 = vadd.f32 1.0, %v976_v7 }
 0x52b   :  { %v657_v13 = vadd.f32 1.0, %v978_v9  ;;  %906 = vmatprep.mubr.msk.f32.mxu1 %vm678_vm4, %v659_v8 }
 0x52c   :  { %907 = vmatmul.mubr.msk.f32.vlgmr.msra.gmra.mrb[2].mxu1 %vm678_vm4, %v660_v10  ;;  %v662_v16 = vmul.f32 %v658_v11, %v646_v14 }
 0x52d   :  { %v661_v15 = vmul.f32 %v657_v13, %v645_v12 }
 0x52f   :  { %909 = vmatprep.mubr.msk.f32.mxu1 %vm678_vm4, %v661_v15 }
 0x530   :  { %910 = vmatmul.mubr.msk.f32.gmra.mrb[4].mxu1 %vm678_vm4, %v662_v16 }
 0x5ff   :  { %v908_v18 = vpop.f32.mrb[2].mxu1 }
 0x600   :  { %v763_v19 = vadd.f32 %v908_v18, %v815_v17  ;;  %v757_v20 = vpop.f32.mrb[3].mxu1 }
 0x601   :  { %v758_v21 = vadd.f32 %v815_v17, %v757_v20 }
 0x602   :  { %v777_v22 = vadd.f32 %v763_v19, %v1147_v32 }
 0x603   :  { %v776_v23 = vadd.f32 %v758_v21, %v1150_v33  ;;  %v911_v24 = vpop.f32.mrb[4].mxu1 }
 0x604   :  { %781 = vst.msk [vmem:[#allocation2 + $0x8] sm:$0xff] %vm51_vm0, %v777_v22  ;;  %v773_v25 = vadd.f32 %v911_v24, %v815_v17  ;;  %v767_v26 = vpop.f32.mrb[5].mxu1 }
 0x605   :  { %780 = vst.msk [vmem:[#allocation2] sm:$0xff] %vm51_vm0, %v776_v23  ;;  %v768_v27 = vadd.f32 %v815_v17, %v767_v26 }
 0x606   :  { %v779_v28 = vadd.f32 %v773_v25, %v1160_v2 }
 0x607   :  { %v778_v29 = vadd.f32 %v768_v27, %v1157_v40 }
 0x608   :  { %783 = vst.msk [vmem:[#allocation2 + $0x18] sm:$0xff] %vm51_vm0, %v779_v28 }
 0x609   :  { %782 = vst.msk [vmem:[#allocation2 + $0x10] sm:$0xff] %vm51_vm0, %v778_v29 }
 0x60a   :  { %990 = shalt.err (!%p987_p4)
}
 0x60b   :  { %s991_s15 = scalar_lea.hbm %s1259_s13, 512 }
 0x60c   :  { %p992_p5 = scmp.ne.s32.totalorder %s1259_s13, %s991_s15  ;;  %p995_p6 = scmp.lt.u32.totalorder %s991_s15, %s1259_s13 }
 0x60e   :  { %p997_p7 = pnand %p995_p6, %p992_p5 }
 0x610   :  { %1000 = shalt.err (!%p997_p7)
}
 0x611   :  { %s1008_s7 = smov 128   ;;  %s1009_s8 = smov 8  }
 0x612   :  { %795 = dma.vmem_to_hbm [thread:$0]  %s790_s29, 512, %s1259_s13, [#allocation3], %s1008_s7, %s1008_s7, %s1009_s8  }
 0x613   :  { %1001 = dma.done.wait [#allocation3], 512  }
 0x614   :  { %1002 = vsyncadd [#allocation3], 4294966784 }
 0x615   :  { %799 = vsyncpa [#allocation3], 1 }

</bundles_post_ra>
